<compile_context>
chip_gen: v7x
topology: tpu7x:2x2x1
jax: 0.10.0
libtpu: 0.0.40
codegen_flags: <defaults>
</compile_context>

<pallas_src>
import math
import functools

import jax
import jax.numpy as jnp
from jax.experimental import pallas as pl
from jax.experimental.pallas import tpu as pltpu


def _mha_kernel(*refs, head_count, d_k, d_v, self_attn, return_attn):
    """One grid step == (batch element b, query tile qt).

    refs layout:
      activations : [x]            if self_attn  (block (1, L, D))
                    [q, k, v]      otherwise     (q block (1, tq, D), k/v (1, Lk, D))
      weights     : wq (D, H*d_k) bf16, bq (1, H*d_k) f32,
                    wk (D, H*d_k) bf16, bk (1, H*d_k) f32,
                    wv (D, H*d_v) bf16, bv (1, H*d_v) f32,
                    wo (H*d_v, D) bf16, bo (1, D) f32
      outputs     : out (1, tq, D) [, attn (1, H, tq, Lk) bf16]
      scratch     : kcache (Lk, H*d_k) bf16, vcache (Lk, H*d_v) bf16,
                    ctx (tq, H*d_v) bf16
    """
    H = head_count
    n_act = 1 if self_attn else 3
    (wq_ref, bq_ref, wk_ref, bk_ref, wv_ref, bv_ref,
     wo_ref, bo_ref) = refs[n_act:n_act + 8]
    out_ref = refs[n_act + 8]
    pos = n_act + 9
    attn_ref = refs[pos] if return_attn else None
    pos += 1 if return_attn else 0
    kcache_ref, vcache_ref, ctx_ref = refs[pos], refs[pos + 1], refs[pos + 2]

    tq = out_ref.shape[1]
    qt = pl.program_id(1)

    # ---- K/V projections: ONE wide-N matmul each, once per batch element.  The
    #      bf16 caches persist in VMEM scratch across all q-tiles of this batch. ----
    @pl.when(qt == 0)
    def _():
        if self_attn:
            xk = refs[0][0].astype(jnp.bfloat16)          # (Lk, D)
            xv = xk
        else:
            xk = refs[1][0].astype(jnp.bfloat16)
            xv = refs[2][0].astype(jnp.bfloat16)
        kcache_ref[...] = (jnp.dot(xk, wk_ref[...],
                                   preferred_element_type=jnp.float32)
                           + bk_ref[...]).astype(jnp.bfloat16)
        vcache_ref[...] = (jnp.dot(xv, wv_ref[...],
                                   preferred_element_type=jnp.float32)
                           + bv_ref[...]).astype(jnp.bfloat16)

    # ---- Q projection for this q-tile (1/sqrt(d_k) already folded into Wq/bq). ----
    if self_attn:
        L = refs[0].shape[1]
        if tq == L:                                        # single tile: no slice
            xq = refs[0][0].astype(jnp.bfloat16)
        else:
            q_start = pl.multiple_of(qt * tq, 8)
            xq = refs[0][0, pl.ds(q_start, tq), :].astype(jnp.bfloat16)
    else:
        xq = refs[0][0].astype(jnp.bfloat16)               # (tq, D)
    q_p = (jnp.dot(xq, wq_ref[...], preferred_element_type=jnp.float32)
           + bq_ref[...]).astype(jnp.bfloat16)             # (tq, H*d_k)

    # ---- Per-head scores / softmax / context.  Static (trace-time) loop with
    #      static lane slices; MXU work is identical to a head-batched einsum, but
    #      this avoids in-kernel reshapes/transposes and keeps the context in the
    #      (tq, H*d_v) layout needed for the fused output projection. ----
    for h in range(H):
        qs = q_p[:, h * d_k:(h + 1) * d_k]                 # (tq, d_k) bf16
        ks = kcache_ref[:, h * d_k:(h + 1) * d_k]          # (Lk, d_k) bf16
        vs = vcache_ref[:, h * d_v:(h + 1) * d_v]          # (Lk, d_v) bf16

        scores = jnp.einsum('qd,kd->qk', qs, ks,
                            preferred_element_type=jnp.float32)   # (tq, Lk) f32
        m = jnp.max(scores, axis=-1, keepdims=True)
        e = jnp.exp(scores - m)
        denom = jnp.sum(e, axis=-1, keepdims=True)
        attn = e * pl.reciprocal(denom, approx=True)       # EUP slot
        if attn_ref is not None:
            attn_ref[0, h] = attn.astype(attn_ref.dtype)   # bf16 HBM write
        # dropout: identity in eval mode

        ctx = jnp.dot(attn.astype(jnp.bfloat16), vs,
                      preferred_element_type=jnp.float32)  # (tq, d_v) f32
        ctx_ref[:, h * d_v:(h + 1) * d_v] = ctx.astype(jnp.bfloat16)

    # ---- Output projection: one matmul; head reduction happens in the MXU K dim. ----
    out = (jnp.dot(ctx_ref[...], wo_ref[...],
                   preferred_element_type=jnp.float32) + bo_ref[...])
    out_ref[0] = out.astype(out_ref.dtype)


def _vmem_limit_bytes():
    """Generation-aware VMEM limit (v5e/v6e: 128 MiB physical, v7x: 64 MiB)."""
    try:
        cap = int(pltpu.get_tpu_info().vmem_capacity_bytes)
    except Exception:
        cap = 64 * 1024 * 1024
    return max(32 * 1024 * 1024, min(int(0.8 * cap), 100 * 1024 * 1024))


def multi_head_attention(key, value, query, params, *, head_count, d_k, d_v,
                         return_attn=False, attn_dtype=jnp.bfloat16,
                         out_dtype=None, q_tile=256):
    """Forward pass.  Returns (output, attn) with attn stacked as
    (B, H, Lq, Lk) in `attn_dtype` (None when return_attn=False); unbind lazily
    at the call site if a per-head list is needed."""
    B, Lq, D = query.shape
    Lk = key.shape[1]
    wq, bq, wk, bk, wv, bv, wo, bo = params
    out_dtype = out_dtype if out_dtype is not None else query.dtype

    # Layout plumbing outside the kernel: fold 1/sqrt(d_k) into Wq/bq, cast weights
    # to bf16 (weights stay FUSED — wide-N projection matmuls), biases stay f32.
    scale = 1.0 / math.sqrt(d_k)
    wq_r = (wq * scale).astype(jnp.bfloat16)
    bq_r = (bq * scale).astype(jnp.float32)
    wk_r = wk.astype(jnp.bfloat16)
    bk_r = bk.astype(jnp.float32)
    wv_r = wv.astype(jnp.bfloat16)
    bv_r = bv.astype(jnp.float32)
    wo_r = wo.astype(jnp.bfloat16)
    bo_r = bo.astype(jnp.float32)

    self_attn = (key is query) and (value is query)

    # Query-tile size: lane/MXU friendly multiple of 8; fall back to a single tile.
    if Lq % q_tile == 0 and q_tile % 8 == 0:
        tq = q_tile
    else:
        tq = Lq          # TODO(synk): pad / remainder handling for ragged Lq
    n_qt = Lq // tq

    kernel = functools.partial(_mha_kernel, head_count=head_count, d_k=d_k,
                               d_v=d_v, self_attn=self_attn,
                               return_attn=return_attn)

    def const_spec(shape):
        # Constant-index full-array blocks (resident weights; not re-DMA'd).
        return pl.BlockSpec(shape, lambda b, qt, _n=len(shape): (0,) * _n)

    if self_attn:
        act_specs = [pl.BlockSpec((1, Lq, D), lambda b, qt: (b, 0, 0))]
        act_args = (query,)
    else:
        act_specs = [
            pl.BlockSpec((1, tq, D), lambda b, qt: (b, qt, 0)),    # query tile
            pl.BlockSpec((1, Lk, D), lambda b, qt: (b, 0, 0)),     # key (per batch)
            pl.BlockSpec((1, Lk, D), lambda b, qt: (b, 0, 0)),     # value (per batch)
        ]
        act_args = (query, key, value)

    in_specs = act_specs + [
        const_spec(wq_r.shape), const_spec(bq_r.shape),
        const_spec(wk_r.shape), const_spec(bk_r.shape),
        const_spec(wv_r.shape), const_spec(bv_r.shape),
        const_spec(wo_r.shape), const_spec(bo_r.shape),
    ]

    out_specs = [pl.BlockSpec((1, tq, D), lambda b, qt: (b, qt, 0))]
    out_shapes = [jax.ShapeDtypeStruct((B, Lq, D), out_dtype)]
    if return_attn:
        out_specs.append(
            pl.BlockSpec((1, head_count, tq, Lk), lambda b, qt: (b, 0, qt, 0)))
        out_shapes.append(
            jax.ShapeDtypeStruct((B, head_count, Lq, Lk), attn_dtype))

    scratch_shapes = [
        pltpu.VMEM((Lk, head_count * d_k), jnp.bfloat16),   # K cache (per batch)
        pltpu.VMEM((Lk, head_count * d_v), jnp.bfloat16),   # V cache (per batch)
        pltpu.VMEM((tq, head_count * d_v), jnp.bfloat16),   # context (per q-tile)
    ]

    grid_spec = pltpu.PrefetchScalarGridSpec(
        num_scalar_prefetch=0,
        grid=(B, n_qt),
        in_specs=in_specs,
        out_specs=tuple(out_specs),
        scratch_shapes=scratch_shapes,
    )

    results = pl.pallas_call(
        kernel,
        grid_spec=grid_spec,
        out_shape=tuple(out_shapes),
        compiler_params=pltpu.CompilerParams(
            # batch is split across TensorCores; q-tile axis must be sequential
            # because the K/V caches are initialized at qt == 0.
            dimension_semantics=("parallel", "arbitrary"),
            vmem_limit_bytes=_vmem_limit_bytes(),
        ),
    )(*act_args, wq_r, bq_r, wk_r, bk_r, wv_r, bv_r, wo_r, bo_r)

    out = results[0]
    attn = results[1] if return_attn else None
    return out, attn


def _reference(key, value, query, params, *, head_count, d_k, d_v):
    """Plain-JAX f32 reference mirroring the PyTorch forward (mask-free path)."""
    wq, bq, wk, bk, wv, bv, wo, bo = params
    B, Lq, D = query.shape

    def shape_heads(x, d):
        return x.reshape(B, -1, head_count, d).transpose(0, 2, 1, 3)

    K = shape_heads(key @ wk + bk[0], d_k)
    V = shape_heads(value @ wv + bv[0], d_v)
    Q = shape_heads(query @ wq + bq[0], d_k) / math.sqrt(d_k)
    scores = jnp.einsum('bhqd,bhkd->bhqk', Q, K)
    attn = jax.nn.softmax(scores, axis=-1)
    ctx = jnp.einsum('bhqk,bhkd->bhqd', attn, V)
    ctx = ctx.transpose(0, 2, 1, 3).reshape(B, Lq, head_count * d_v)
    return ctx @ wo + bo[0], attn


def _init_params(rng, model_dim, head_count, d_k, d_v):
    ks = jax.random.split(rng, 8)
    s = 0.05
    wq = s * jax.random.normal(ks[0], (model_dim, head_count * d_k), jnp.float32)
    bq = s * jax.random.normal(ks[1], (1, head_count * d_k), jnp.float32)
    wk = s * jax.random.normal(ks[2], (model_dim, head_count * d_k), jnp.float32)
    bk = s * jax.random.normal(ks[3], (1, head_count * d_k), jnp.float32)
    wv = s * jax.random.normal(ks[4], (model_dim, head_count * d_v), jnp.float32)
    bv = s * jax.random.normal(ks[5], (1, head_count * d_v), jnp.float32)
    wo = s * jax.random.normal(ks[6], (head_count * d_v, model_dim), jnp.float32)
    bo = s * jax.random.normal(ks[7], (1, model_dim), jnp.float32)
    return (wq, bq, wk, bk, wv, bv, wo, bo)


if __name__ == "__main__":
    B, Lq, Lk, D = 2, 8, 8, 32
    head_count, d_k, d_v = 4, 8, 8

    root = jax.random.PRNGKey(0)
    k_in, k_q, k_k, k_v = jax.random.split(root, 4)
    params = _init_params(k_in, D, head_count, d_k, d_v)

    query = jax.random.normal(k_q, (B, Lq, D), jnp.float32)
    key = jax.random.normal(k_k, (B, Lk, D), jnp.float32)
    value = jax.random.normal(k_v, (B, Lk, D), jnp.float32)

    # ---- cross-attention path, attention probabilities requested (bf16) ----
    out, attn = multi_head_attention(
        key, value, query, params, head_count=head_count, d_k=d_k, d_v=d_v,
        return_attn=True)
    out = jax.block_until_ready(out)
    attn = jax.block_until_ready(attn)

    ref_out, ref_attn = _reference(
        key, value, query, params, head_count=head_count, d_k=d_k, d_v=d_v)
    assert out.shape == (B, Lq, D)
    assert attn.shape == (B, head_count, Lq, Lk)
    assert jnp.allclose(out, ref_out, atol=1e-2), "output mismatch (cross-attn)"
    assert jnp.allclose(attn.astype(jnp.float32), ref_attn, atol=1e-2), "attn mismatch"

    # module-API per-head list can be unbound lazily at the call site:
    attn_per_head = [attn[:, h] for h in range(head_count)]
    assert attn_per_head[0].shape == (B, Lq, Lk)

    # ---- self-attention path (single activation DMA stream), attn dropped ----
    out_sa, attn_sa = multi_head_attention(
        query, query, query, params, head_count=head_count, d_k=d_k, d_v=d_v)
    out_sa = jax.block_until_ready(out_sa)
    ref_sa, _ = _reference(
        query, query, query, params, head_count=head_count, d_k=d_k, d_v=d_v)
    assert attn_sa is None
    assert jnp.allclose(out_sa, ref_sa, atol=1e-2), "output mismatch (self-attn)"

    print("KERNEL_OK")
</pallas_src>

<mosaic_0001>
module attributes {stable_mosaic.version = 11 : i64} {
  func.func @_mha_kernel(%arg0: i32, %arg1: i32, %arg2: memref<1x8x32xf32, #tpu.memory_space<vmem>>, %arg3: memref<1x8x32xf32, #tpu.memory_space<vmem>>, %arg4: memref<1x8x32xf32, #tpu.memory_space<vmem>>, %arg5: memref<32x32xbf16, #tpu.memory_space<vmem>>, %arg6: memref<1x32xf32, #tpu.memory_space<vmem>>, %arg7: memref<32x32xbf16, #tpu.memory_space<vmem>>, %arg8: memref<1x32xf32, #tpu.memory_space<vmem>>, %arg9: memref<32x32xbf16, #tpu.memory_space<vmem>>, %arg10: memref<1x32xf32, #tpu.memory_space<vmem>>, %arg11: memref<32x32xbf16, #tpu.memory_space<vmem>>, %arg12: memref<1x32xf32, #tpu.memory_space<vmem>>, %arg13: memref<1x8x32xf32, #tpu.memory_space<vmem>>, %arg14: memref<1x4x8x8xbf16, #tpu.memory_space<vmem>>, %arg15: memref<8x32xbf16, #tpu.memory_space<vmem>>, %arg16: memref<8x32xbf16, #tpu.memory_space<vmem>>, %arg17: memref<8x32xbf16, #tpu.memory_space<vmem>>) attributes {dimension_semantics = [#tpu.dimension_semantics<parallel>, #tpu.dimension_semantics<arbitrary>], iteration_bounds = array<i64: 2, 1>, scalar_prefetch = 0 : i64, scratch_operands = 3 : i64, tpu.core_type = #tpu.core_type<tc>, window_params = [{transform_indices = @transform_0, window_bounds = array<i64: 1, 8, 32>}, {transform_indices = @transform_1, window_bounds = array<i64: 1, 8, 32>}, {transform_indices = @transform_2, window_bounds = array<i64: 1, 8, 32>}, {pipeline_mode = #tpu.pipeline_mode<synchronous>, transform_indices = @transform_3, window_bounds = array<i64: 32, 32>}, {pipeline_mode = #tpu.pipeline_mode<synchronous>, transform_indices = @transform_4, window_bounds = array<i64: 1, 32>}, {pipeline_mode = #tpu.pipeline_mode<synchronous>, transform_indices = @transform_5, window_bounds = array<i64: 32, 32>}, {pipeline_mode = #tpu.pipeline_mode<synchronous>, transform_indices = @transform_6, window_bounds = array<i64: 1, 32>}, {pipeline_mode = #tpu.pipeline_mode<synchronous>, transform_indices = @transform_7, window_bounds = array<i64: 32, 32>}, {pipeline_mode = #tpu.pipeline_mode<synchronous>, transform_indices = @transform_8, window_bounds = array<i64: 1, 32>}, {pipeline_mode = #tpu.pipeline_mode<synchronous>, transform_indices = @transform_9, window_bounds = array<i64: 32, 32>}, {pipeline_mode = #tpu.pipeline_mode<synchronous>, transform_indices = @transform_10, window_bounds = array<i64: 1, 32>}, {transform_indices = @transform_11, window_bounds = array<i64: 1, 8, 32>}, {transform_indices = @transform_12, window_bounds = array<i64: 1, 4, 8, 8>}]} {
    %c0_i32 = arith.constant 0 : i32
    %0 = arith.cmpi eq, %arg1, %c0_i32 : i32
    %1 = arith.extui %0 : i1 to i32
    %c0_i32_0 = arith.constant 0 : i32
    %2 = arith.cmpi ne, %1, %c0_i32_0 : i32
    scf.if %2 {
      %c0_67 = arith.constant 0 : index
      %c0_68 = arith.constant 0 : index
      %c0_69 = arith.constant 0 : index
      %109 = vector.load %arg3[%c0_67, %c0_68, %c0_69] : memref<1x8x32xf32, #tpu.memory_space<vmem>>, vector<1x8x32xf32>
      %110 = vector.shape_cast %109 : vector<1x8x32xf32> to vector<8x32xf32>
      %111 = arith.truncf %110 : vector<8x32xf32> to vector<8x32xbf16>
      %c0_70 = arith.constant 0 : index
      %c0_71 = arith.constant 0 : index
      %c0_72 = arith.constant 0 : index
      %112 = vector.load %arg4[%c0_70, %c0_71, %c0_72] : memref<1x8x32xf32, #tpu.memory_space<vmem>>, vector<1x8x32xf32>
      %113 = vector.shape_cast %112 : vector<1x8x32xf32> to vector<8x32xf32>
      %114 = arith.truncf %113 : vector<8x32xf32> to vector<8x32xbf16>
      %c0_73 = arith.constant 0 : index
      %c0_74 = arith.constant 0 : index
      %115 = vector.load %arg7[%c0_73, %c0_74] : memref<32x32xbf16, #tpu.memory_space<vmem>>, vector<32x32xbf16>
      %cst_75 = arith.constant dense<0.000000e+00> : vector<8x32xf32>
      %116 = tpu.matmul %111, %115, %cst_75 {dimension_numbers = #tpu.dot_dimension_numbers<[1], [0], [0], [1], [0, 0, 1, 1], [], []>} : vector<8x32xbf16>, vector<32x32xbf16>, vector<8x32xf32> -> vector<8x32xf32>
      %c0_76 = arith.constant 0 : index
      %c0_77 = arith.constant 0 : index
      %117 = vector.load %arg8[%c0_76, %c0_77] : memref<1x32xf32, #tpu.memory_space<vmem>>, vector<1x32xf32>
      %118 = vector.broadcast %117 : vector<1x32xf32> to vector<8x32xf32>
      %119 = arith.addf %116, %118 : vector<8x32xf32>
      %120 = arith.truncf %119 : vector<8x32xf32> to vector<8x32xbf16>
      %c0_78 = arith.constant 0 : index
      %c0_79 = arith.constant 0 : index
      %121 = vector.load %arg15[%c0_78, %c0_79] : memref<8x32xbf16, #tpu.memory_space<vmem>>, vector<8x32xbf16>
      tpu.vector_store %arg15[%c0_78, %c0_79], %120 {strides = array<i32>} : memref<8x32xbf16, #tpu.memory_space<vmem>>, vector<8x32xbf16>,
      %c0_80 = arith.constant 0 : index
      %c0_81 = arith.constant 0 : index
      %122 = vector.load %arg9[%c0_80, %c0_81] : memref<32x32xbf16, #tpu.memory_space<vmem>>, vector<32x32xbf16>
      %cst_82 = arith.constant dense<0.000000e+00> : vector<8x32xf32>
      %123 = tpu.matmul %114, %122, %cst_82 {dimension_numbers = #tpu.dot_dimension_numbers<[1], [0], [0], [1], [0, 0, 1, 1], [], []>} : vector<8x32xbf16>, vector<32x32xbf16>, vector<8x32xf32> -> vector<8x32xf32>
      %c0_83 = arith.constant 0 : index
      %c0_84 = arith.constant 0 : index
      %124 = vector.load %arg10[%c0_83, %c0_84] : memref<1x32xf32, #tpu.memory_space<vmem>>, vector<1x32xf32>
      %125 = vector.broadcast %124 : vector<1x32xf32> to vector<8x32xf32>
      %126 = arith.addf %123, %125 : vector<8x32xf32>
      %127 = arith.truncf %126 : vector<8x32xf32> to vector<8x32xbf16>
      %c0_85 = arith.constant 0 : index
      %c0_86 = arith.constant 0 : index
      %128 = vector.load %arg16[%c0_85, %c0_86] : memref<8x32xbf16, #tpu.memory_space<vmem>>, vector<8x32xbf16>
      tpu.vector_store %arg16[%c0_85, %c0_86], %127 {strides = array<i32>} : memref<8x32xbf16, #tpu.memory_space<vmem>>, vector<8x32xbf16>,
    } else {
    }
    %c0 = arith.constant 0 : index
    %c0_1 = arith.constant 0 : index
    %c0_2 = arith.constant 0 : index
    %3 = vector.load %arg2[%c0, %c0_1, %c0_2] : memref<1x8x32xf32, #tpu.memory_space<vmem>>, vector<1x8x32xf32>
    %4 = vector.shape_cast %3 : vector<1x8x32xf32> to vector<8x32xf32>
    %5 = arith.truncf %4 : vector<8x32xf32> to vector<8x32xbf16>
    %c0_3 = arith.constant 0 : index
    %c0_4 = arith.constant 0 : index
    %6 = vector.load %arg5[%c0_3, %c0_4] : memref<32x32xbf16, #tpu.memory_space<vmem>>, vector<32x32xbf16>
    %cst = arith.constant dense<0.000000e+00> : vector<8x32xf32>
    %7 = tpu.matmul %5, %6, %cst {dimension_numbers = #tpu.dot_dimension_numbers<[1], [0], [0], [1], [0, 0, 1, 1], [], []>} : vector<8x32xbf16>, vector<32x32xbf16>, vector<8x32xf32> -> vector<8x32xf32>
    %c0_5 = arith.constant 0 : index
    %c0_6 = arith.constant 0 : index
    %8 = vector.load %arg6[%c0_5, %c0_6] : memref<1x32xf32, #tpu.memory_space<vmem>>, vector<1x32xf32>
    %9 = vector.broadcast %8 : vector<1x32xf32> to vector<8x32xf32>
    %10 = arith.addf %7, %9 : vector<8x32xf32>
    %11 = arith.truncf %10 : vector<8x32xf32> to vector<8x32xbf16>
    %12 = vector.extract_strided_slice %11 {offsets = [0, 0], sizes = [8, 8], strides = [1, 1]} : vector<8x32xbf16> to vector<8x8xbf16>
    %c0_7 = arith.constant 0 : index
    %c0_8 = arith.constant 0 : index
    %13 = vector.load %arg15[%c0_7, %c0_8] : memref<8x32xbf16, #tpu.memory_space<vmem>>, vector<8x8xbf16>
    %c0_9 = arith.constant 0 : index
    %c0_10 = arith.constant 0 : index
    %14 = vector.load %arg16[%c0_9, %c0_10] : memref<8x32xbf16, #tpu.memory_space<vmem>>, vector<8x8xbf16>
    "tpu.trace_start"() <{level = 10 : i32, message = "qd,kd->qk"}> : () -> ()
    %cst_11 = arith.constant dense<0.000000e+00> : vector<8x8xf32>
    %15 = tpu.matmul %12, %13, %cst_11 {dimension_numbers = #tpu.dot_dimension_numbers<[1], [1], [0], [0], [0, 0, 1, 0], [], []>} : vector<8x8xbf16>, vector<8x8xbf16>, vector<8x8xf32> -> vector<8x8xf32>
    "tpu.trace_stop"() : () -> ()
    %cst_12 = arith.constant dense<0xFF800000> : vector<8xf32>
    %16 = vector.multi_reduction <maximumf>, %15, %cst_12 [1] : vector<8x8xf32> to vector<8xf32>
    %17 = vector.shape_cast %16 : vector<8xf32> to vector<8x1xf32>
    %18 = vector.broadcast %17 : vector<8x1xf32> to vector<8x8xf32>
    %19 = arith.subf %15, %18 : vector<8x8xf32>
    %20 = math.exp %19 : vector<8x8xf32>
    %cst_13 = arith.constant dense<0.000000e+00> : vector<8xf32>
    %21 = vector.multi_reduction <add>, %20, %cst_13 [1] : vector<8x8xf32> to vector<8xf32>
    %22 = vector.shape_cast %21 : vector<8xf32> to vector<8x1xf32>
    %23 = tpu.reciprocal %22 {approx = true} : vector<8x1xf32> -> vector<8x1xf32>
    %24 = vector.broadcast %23 : vector<8x1xf32> to vector<8x8xf32>
    %25 = arith.mulf %20, %24 : vector<8x8xf32>
    %26 = arith.truncf %25 : vector<8x8xf32> to vector<8x8xbf16>
    %c0_14 = arith.constant 0 : index
    %c0_15 = arith.constant 0 : index
    %c0_16 = arith.constant 0 : index
    %c0_17 = arith.constant 0 : index
    %27 = vector.load %arg14[%c0_14, %c0_15, %c0_16, %c0_17] : memref<1x4x8x8xbf16, #tpu.memory_space<vmem>>, vector<1x1x8x8xbf16>
    %28 = vector.shape_cast %27 : vector<1x1x8x8xbf16> to vector<8x8xbf16>
    %29 = vector.shape_cast %26 : vector<8x8xbf16> to vector<1x1x8x8xbf16>
    tpu.vector_store %arg14[%c0_14, %c0_15, %c0_16, %c0_17], %29 {strides = array<i32>} : memref<1x4x8x8xbf16, #tpu.memory_space<vmem>>, vector<1x1x8x8xbf16>,
    %30 = arith.truncf %25 : vector<8x8xf32> to vector<8x8xbf16>
    %cst_18 = arith.constant dense<0.000000e+00> : vector<8x8xf32>
    %31 = tpu.matmul %30, %14, %cst_18 {dimension_numbers = #tpu.dot_dimension_numbers<[1], [0], [0], [1], [0, 0, 1, 1], [], []>} : vector<8x8xbf16>, vector<8x8xbf16>, vector<8x8xf32> -> vector<8x8xf32>
    %32 = arith.truncf %31 : vector<8x8xf32> to vector<8x8xbf16>
    %c0_19 = arith.constant 0 : index
    %c0_20 = arith.constant 0 : index
    %33 = vector.load %arg17[%c0_19, %c0_20] : memref<8x32xbf16, #tpu.memory_space<vmem>>, vector<8x8xbf16>
    tpu.vector_store %arg17[%c0_19, %c0_20], %32 {strides = array<i32>} : memref<8x32xbf16, #tpu.memory_space<vmem>>, vector<8x8xbf16>,
    %34 = vector.extract_strided_slice %11 {offsets = [0, 8], sizes = [8, 8], strides = [1, 1]} : vector<8x32xbf16> to vector<8x8xbf16>
    %c0_21 = arith.constant 0 : index
    %c8 = arith.constant 8 : index
    %35 = vector.load %arg15[%c0_21, %c8] : memref<8x32xbf16, #tpu.memory_space<vmem>>, vector<8x8xbf16>
    %c0_22 = arith.constant 0 : index
    %c8_23 = arith.constant 8 : index
    %36 = vector.load %arg16[%c0_22, %c8_23] : memref<8x32xbf16, #tpu.memory_space<vmem>>, vector<8x8xbf16>
    "tpu.trace_start"() <{level = 10 : i32, message = "qd,kd->qk"}> : () -> ()
    %cst_24 = arith.constant dense<0.000000e+00> : vector<8x8xf32>
    %37 = tpu.matmul %34, %35, %cst_24 {dimension_numbers = #tpu.dot_dimension_numbers<[1], [1], [0], [0], [0, 0, 1, 0], [], []>} : vector<8x8xbf16>, vector<8x8xbf16>, vector<8x8xf32> -> vector<8x8xf32>
    "tpu.trace_stop"() : () -> ()
    %cst_25 = arith.constant dense<0xFF800000> : vector<8xf32>
    %38 = vector.multi_reduction <maximumf>, %37, %cst_25 [1] : vector<8x8xf32> to vector<8xf32>
    %39 = vector.shape_cast %38 : vector<8xf32> to vector<8x1xf32>
    %40 = vector.broadcast %39 : vector<8x1xf32> to vector<8x8xf32>
    %41 = arith.subf %37, %40 : vector<8x8xf32>
    %42 = math.exp %41 : vector<8x8xf32>
    %cst_26 = arith.constant dense<0.000000e+00> : vector<8xf32>
    %43 = vector.multi_reduction <add>, %42, %cst_26 [1] : vector<8x8xf32> to vector<8xf32>
    %44 = vector.shape_cast %43 : vector<8xf32> to vector<8x1xf32>
    %45 = tpu.reciprocal %44 {approx = true} : vector<8x1xf32> -> vector<8x1xf32>
    %46 = vector.broadcast %45 : vector<8x1xf32> to vector<8x8xf32>
    %47 = arith.mulf %42, %46 : vector<8x8xf32>
    %48 = arith.truncf %47 : vector<8x8xf32> to vector<8x8xbf16>
    %c0_27 = arith.constant 0 : index
    %c1 = arith.constant 1 : index
    %c0_28 = arith.constant 0 : index
    %c0_29 = arith.constant 0 : index
    %49 = vector.load %arg14[%c0_27, %c1, %c0_28, %c0_29] : memref<1x4x8x8xbf16, #tpu.memory_space<vmem>>, vector<1x1x8x8xbf16>
    %50 = vector.shape_cast %49 : vector<1x1x8x8xbf16> to vector<8x8xbf16>
    %51 = vector.shape_cast %48 : vector<8x8xbf16> to vector<1x1x8x8xbf16>
    tpu.vector_store %arg14[%c0_27, %c1, %c0_28, %c0_29], %51 {strides = array<i32>} : memref<1x4x8x8xbf16, #tpu.memory_space<vmem>>, vector<1x1x8x8xbf16>,
    %52 = arith.truncf %47 : vector<8x8xf32> to vector<8x8xbf16>
    %cst_30 = arith.constant dense<0.000000e+00> : vector<8x8xf32>
    %53 = tpu.matmul %52, %36, %cst_30 {dimension_numbers = #tpu.dot_dimension_numbers<[1], [0], [0], [1], [0, 0, 1, 1], [], []>} : vector<8x8xbf16>, vector<8x8xbf16>, vector<8x8xf32> -> vector<8x8xf32>
    %54 = arith.truncf %53 : vector<8x8xf32> to vector<8x8xbf16>
    %c0_31 = arith.constant 0 : index
    %c8_32 = arith.constant 8 : index
    %55 = vector.load %arg17[%c0_31, %c8_32] : memref<8x32xbf16, #tpu.memory_space<vmem>>, vector<8x8xbf16>
    tpu.vector_store %arg17[%c0_31, %c8_32], %54 {strides = array<i32>} : memref<8x32xbf16, #tpu.memory_space<vmem>>, vector<8x8xbf16>,
    %56 = vector.extract_strided_slice %11 {offsets = [0, 16], sizes = [8, 8], strides = [1, 1]} : vector<8x32xbf16> to vector<8x8xbf16>
    %c0_33 = arith.constant 0 : index
    %c16 = arith.constant 16 : index
    %57 = vector.load %arg15[%c0_33, %c16] : memref<8x32xbf16, #tpu.memory_space<vmem>>, vector<8x8xbf16>
    %c0_34 = arith.constant 0 : index
    %c16_35 = arith.constant 16 : index
    %58 = vector.load %arg16[%c0_34, %c16_35] : memref<8x32xbf16, #tpu.memory_space<vmem>>, vector<8x8xbf16>
    "tpu.trace_start"() <{level = 10 : i32, message = "qd,kd->qk"}> : () -> ()
    %cst_36 = arith.constant dense<0.000000e+00> : vector<8x8xf32>
    %59 = tpu.matmul %56, %57, %cst_36 {dimension_numbers = #tpu.dot_dimension_numbers<[1], [1], [0], [0], [0, 0, 1, 0], [], []>} : vector<8x8xbf16>, vector<8x8xbf16>, vector<8x8xf32> -> vector<8x8xf32>
    "tpu.trace_stop"() : () -> ()
    %cst_37 = arith.constant dense<0xFF800000> : vector<8xf32>
    %60 = vector.multi_reduction <maximumf>, %59, %cst_37 [1] : vector<8x8xf32> to vector<8xf32>
    %61 = vector.shape_cast %60 : vector<8xf32> to vector<8x1xf32>
    %62 = vector.broadcast %61 : vector<8x1xf32> to vector<8x8xf32>
    %63 = arith.subf %59, %62 : vector<8x8xf32>
    %64 = math.exp %63 : vector<8x8xf32>
    %cst_38 = arith.constant dense<0.000000e+00> : vector<8xf32>
    %65 = vector.multi_reduction <add>, %64, %cst_38 [1] : vector<8x8xf32> to vector<8xf32>
    %66 = vector.shape_cast %65 : vector<8xf32> to vector<8x1xf32>
    %67 = tpu.reciprocal %66 {approx = true} : vector<8x1xf32> -> vector<8x1xf32>
    %68 = vector.broadcast %67 : vector<8x1xf32> to vector<8x8xf32>
    %69 = arith.mulf %64, %68 : vector<8x8xf32>
    %70 = arith.truncf %69 : vector<8x8xf32> to vector<8x8xbf16>
    %c0_39 = arith.constant 0 : index
    %c2 = arith.constant 2 : index
    %c0_40 = arith.constant 0 : index
    %c0_41 = arith.constant 0 : index
    %71 = vector.load %arg14[%c0_39, %c2, %c0_40, %c0_41] : memref<1x4x8x8xbf16, #tpu.memory_space<vmem>>, vector<1x1x8x8xbf16>
    %72 = vector.shape_cast %71 : vector<1x1x8x8xbf16> to vector<8x8xbf16>
    %73 = vector.shape_cast %70 : vector<8x8xbf16> to vector<1x1x8x8xbf16>
    tpu.vector_store %arg14[%c0_39, %c2, %c0_40, %c0_41], %73 {strides = array<i32>} : memref<1x4x8x8xbf16, #tpu.memory_space<vmem>>, vector<1x1x8x8xbf16>,
    %74 = arith.truncf %69 : vector<8x8xf32> to vector<8x8xbf16>
    %cst_42 = arith.constant dense<0.000000e+00> : vector<8x8xf32>
    %75 = tpu.matmul %74, %58, %cst_42 {dimension_numbers = #tpu.dot_dimension_numbers<[1], [0], [0], [1], [0, 0, 1, 1], [], []>} : vector<8x8xbf16>, vector<8x8xbf16>, vector<8x8xf32> -> vector<8x8xf32>
    %76 = arith.truncf %75 : vector<8x8xf32> to vector<8x8xbf16>
    %c0_43 = arith.constant 0 : index
    %c16_44 = arith.constant 16 : index
    %77 = vector.load %arg17[%c0_43, %c16_44] : memref<8x32xbf16, #tpu.memory_space<vmem>>, vector<8x8xbf16>
    tpu.vector_store %arg17[%c0_43, %c16_44], %76 {strides = array<i32>} : memref<8x32xbf16, #tpu.memory_space<vmem>>, vector<8x8xbf16>,
    %78 = vector.extract_strided_slice %11 {offsets = [0, 24], sizes = [8, 8], strides = [1, 1]} : vector<8x32xbf16> to vector<8x8xbf16>
    %c0_45 = arith.constant 0 : index
    %c24 = arith.constant 24 : index
    %79 = vector.load %arg15[%c0_45, %c24] : memref<8x32xbf16, #tpu.memory_space<vmem>>, vector<8x8xbf16>
    %c0_46 = arith.constant 0 : index
    %c24_47 = arith.constant 24 : index
    %80 = vector.load %arg16[%c0_46, %c24_47] : memref<8x32xbf16, #tpu.memory_space<vmem>>, vector<8x8xbf16>
    "tpu.trace_start"() <{level = 10 : i32, message = "qd,kd->qk"}> : () -> ()
    %cst_48 = arith.constant dense<0.000000e+00> : vector<8x8xf32>
    %81 = tpu.matmul %78, %79, %cst_48 {dimension_numbers = #tpu.dot_dimension_numbers<[1], [1], [0], [0], [0, 0, 1, 0], [], []>} : vector<8x8xbf16>, vector<8x8xbf16>, vector<8x8xf32> -> vector<8x8xf32>
    "tpu.trace_stop"() : () -> ()
    %cst_49 = arith.constant dense<0xFF800000> : vector<8xf32>
    %82 = vector.multi_reduction <maximumf>, %81, %cst_49 [1] : vector<8x8xf32> to vector<8xf32>
    %83 = vector.shape_cast %82 : vector<8xf32> to vector<8x1xf32>
    %84 = vector.broadcast %83 : vector<8x1xf32> to vector<8x8xf32>
    %85 = arith.subf %81, %84 : vector<8x8xf32>
    %86 = math.exp %85 : vector<8x8xf32>
    %cst_50 = arith.constant dense<0.000000e+00> : vector<8xf32>
    %87 = vector.multi_reduction <add>, %86, %cst_50 [1] : vector<8x8xf32> to vector<8xf32>
    %88 = vector.shape_cast %87 : vector<8xf32> to vector<8x1xf32>
    %89 = tpu.reciprocal %88 {approx = true} : vector<8x1xf32> -> vector<8x1xf32>
    %90 = vector.broadcast %89 : vector<8x1xf32> to vector<8x8xf32>
    %91 = arith.mulf %86, %90 : vector<8x8xf32>
    %92 = arith.truncf %91 : vector<8x8xf32> to vector<8x8xbf16>
    %c0_51 = arith.constant 0 : index
    %c3 = arith.constant 3 : index
    %c0_52 = arith.constant 0 : index
    %c0_53 = arith.constant 0 : index
    %93 = vector.load %arg14[%c0_51, %c3, %c0_52, %c0_53] : memref<1x4x8x8xbf16, #tpu.memory_space<vmem>>, vector<1x1x8x8xbf16>
    %94 = vector.shape_cast %93 : vector<1x1x8x8xbf16> to vector<8x8xbf16>
    %95 = vector.shape_cast %92 : vector<8x8xbf16> to vector<1x1x8x8xbf16>
    tpu.vector_store %arg14[%c0_51, %c3, %c0_52, %c0_53], %95 {strides = array<i32>} : memref<1x4x8x8xbf16, #tpu.memory_space<vmem>>, vector<1x1x8x8xbf16>,
    %96 = arith.truncf %91 : vector<8x8xf32> to vector<8x8xbf16>
    %cst_54 = arith.constant dense<0.000000e+00> : vector<8x8xf32>
    %97 = tpu.matmul %96, %80, %cst_54 {dimension_numbers = #tpu.dot_dimension_numbers<[1], [0], [0], [1], [0, 0, 1, 1], [], []>} : vector<8x8xbf16>, vector<8x8xbf16>, vector<8x8xf32> -> vector<8x8xf32>
    %98 = arith.truncf %97 : vector<8x8xf32> to vector<8x8xbf16>
    %c0_55 = arith.constant 0 : index
    %c24_56 = arith.constant 24 : index
    %99 = vector.load %arg17[%c0_55, %c24_56] : memref<8x32xbf16, #tpu.memory_space<vmem>>, vector<8x8xbf16>
    tpu.vector_store %arg17[%c0_55, %c24_56], %98 {strides = array<i32>} : memref<8x32xbf16, #tpu.memory_space<vmem>>, vector<8x8xbf16>,
    %c0_57 = arith.constant 0 : index
    %c0_58 = arith.constant 0 : index
    %100 = vector.load %arg17[%c0_57, %c0_58] : memref<8x32xbf16, #tpu.memory_space<vmem>>, vector<8x32xbf16>
    %c0_59 = arith.constant 0 : index
    %c0_60 = arith.constant 0 : index
    %101 = vector.load %arg11[%c0_59, %c0_60] : memref<32x32xbf16, #tpu.memory_space<vmem>>, vector<32x32xbf16>
    %cst_61 = arith.constant dense<0.000000e+00> : vector<8x32xf32>
    %102 = tpu.matmul %100, %101, %cst_61 {dimension_numbers = #tpu.dot_dimension_numbers<[1], [0], [0], [1], [0, 0, 1, 1], [], []>} : vector<8x32xbf16>, vector<32x32xbf16>, vector<8x32xf32> -> vector<8x32xf32>
    %c0_62 = arith.constant 0 : index
    %c0_63 = arith.constant 0 : index
    %103 = vector.load %arg12[%c0_62, %c0_63] : memref<1x32xf32, #tpu.memory_space<vmem>>, vector<1x32xf32>
    %104 = vector.broadcast %103 : vector<1x32xf32> to vector<8x32xf32>
    %105 = arith.addf %102, %104 : vector<8x32xf32>
    %c0_64 = arith.constant 0 : index
    %c0_65 = arith.constant 0 : index
    %c0_66 = arith.constant 0 : index
    %106 = vector.load %arg13[%c0_64, %c0_65, %c0_66] : memref<1x8x32xf32, #tpu.memory_space<vmem>>, vector<1x8x32xf32>
    %107 = vector.shape_cast %106 : vector<1x8x32xf32> to vector<8x32xf32>
    %108 = vector.shape_cast %105 : vector<8x32xf32> to vector<1x8x32xf32>
    tpu.vector_store %arg13[%c0_64, %c0_65, %c0_66], %108 {strides = array<i32>} : memref<1x8x32xf32, #tpu.memory_space<vmem>>, vector<1x8x32xf32>,
    return
  }
  func.func @transform_0(%arg0: i32, %arg1: i32) -> (i32, i32, i32) {
    %c0_i32 = arith.constant 0 : i32
    %c0_i32_0 = arith.constant 0 : i32
    return %arg0, %arg1, %c0_i32 : i32, i32, i32
  }
  func.func @transform_1(%arg0: i32, %arg1: i32) -> (i32, i32, i32) {
    %c0_i32 = arith.constant 0 : i32
    %c0_i32_0 = arith.constant 0 : i32
    %c0_i32_1 = arith.constant 0 : i32
    return %arg0, %c0_i32, %c0_i32_0 : i32, i32, i32
  }
  func.func @transform_2(%arg0: i32, %arg1: i32) -> (i32, i32, i32) {
    %c0_i32 = arith.constant 0 : i32
    %c0_i32_0 = arith.constant 0 : i32
    %c0_i32_1 = arith.constant 0 : i32
    return %arg0, %c0_i32, %c0_i32_0 : i32, i32, i32
  }
  func.func @transform_3(%arg0: i32, %arg1: i32) -> (i32, i32) {
    %c0_i32 = arith.constant 0 : i32
    %c0_i32_0 = arith.constant 0 : i32
    %c0_i32_1 = arith.constant 0 : i32
    return %c0_i32, %c0_i32_0 : i32, i32
  }
  func.func @transform_4(%arg0: i32, %arg1: i32) -> (i32, i32) {
    %c0_i32 = arith.constant 0 : i32
    %c0_i32_0 = arith.constant 0 : i32
    %c0_i32_1 = arith.constant 0 : i32
    return %c0_i32, %c0_i32_0 : i32, i32
  }
  func.func @transform_5(%arg0: i32, %arg1: i32) -> (i32, i32) {
    %c0_i32 = arith.constant 0 : i32
    %c0_i32_0 = arith.constant 0 : i32
    %c0_i32_1 = arith.constant 0 : i32
    return %c0_i32, %c0_i32_0 : i32, i32
  }
  func.func @transform_6(%arg0: i32, %arg1: i32) -> (i32, i32) {
    %c0_i32 = arith.constant 0 : i32
    %c0_i32_0 = arith.constant 0 : i32
    %c0_i32_1 = arith.constant 0 : i32
    return %c0_i32, %c0_i32_0 : i32, i32
  }
  func.func @transform_7(%arg0: i32, %arg1: i32) -> (i32, i32) {
    %c0_i32 = arith.constant 0 : i32
    %c0_i32_0 = arith.constant 0 : i32
    %c0_i32_1 = arith.constant 0 : i32
    return %c0_i32, %c0_i32_0 : i32, i32
  }
  func.func @transform_8(%arg0: i32, %arg1: i32) -> (i32, i32) {
    %c0_i32 = arith.constant 0 : i32
    %c0_i32_0 = arith.constant 0 : i32
    %c0_i32_1 = arith.constant 0 : i32
    return %c0_i32, %c0_i32_0 : i32, i32
  }
  func.func @transform_9(%arg0: i32, %arg1: i32) -> (i32, i32) {
    %c0_i32 = arith.constant 0 : i32
    %c0_i32_0 = arith.constant 0 : i32
    %c0_i32_1 = arith.constant 0 : i32
    return %c0_i32, %c0_i32_0 : i32, i32
  }
  func.func @transform_10(%arg0: i32, %arg1: i32) -> (i32, i32) {
    %c0_i32 = arith.constant 0 : i32
    %c0_i32_0 = arith.constant 0 : i32
    %c0_i32_1 = arith.constant 0 : i32
    return %c0_i32, %c0_i32_0 : i32, i32
  }
  func.func @transform_11(%arg0: i32, %arg1: i32) -> (i32, i32, i32) {
    %c0_i32 = arith.constant 0 : i32
    %c0_i32_0 = arith.constant 0 : i32
    return %arg0, %arg1, %c0_i32 : i32, i32, i32
  }
  func.func @transform_12(%arg0: i32, %arg1: i32) -> (i32, i32, i32, i32) {
    %c0_i32 = arith.constant 0 : i32
    %c0_i32_0 = arith.constant 0 : i32
    %c0_i32_1 = arith.constant 0 : i32
    return %arg0, %c0_i32, %arg1, %c0_i32_0 : i32, i32, i32, i32
  }
}

</mosaic_0001>

<bundles_post_ra>
// kernel: tpu_custom_call.1
= control target key start
LH: loop header
LB: loop body
LE: loop exit
PB: predicated region body
PF: predicated region fallthrough
CT: control target
= control target key end

     0   :  { %s2781_s0 = inlined_call_operand.hbm [shape: f32[2,8,32], index: 0, kind: input, shape index: {}]   ;;  %s2782_s1 = inlined_call_operand.hbm [shape: f32[2,8,32], index: 1, kind: input, shape index: {}]   ;;  %s2783_s2 = inlined_call_operand.hbm [shape: f32[2,8,32], index: 2, kind: input, shape index: {}]   ;;  %s2784_s3 = inlined_call_operand.hbm [shape: bf16[32,32], index: 3, kind: input, shape index: {}]   ;;  %s2785_s4 = inlined_call_operand.vmem [shape: f32[1,32], index: 4, kind: input, shape index: {}]   ;;  %s2786_s5 = inlined_call_operand.vmem [shape: bf16[32,32], index: 5, kind: input, shape index: {}]   ;;  %s2787_s6 = inlined_call_operand.vmem [shape: f32[1,32], index: 6, kind: input, shape index: {}]   ;;  %s2788_s7 = inlined_call_operand.hbm [shape: bf16[32,32], index: 7, kind: input, shape index: {}]   ;;  %s2789_s8 = inlined_call_operand.hbm [shape: f32[1,32], index: 8, kind: input, shape index: {}]   ;;  %s2790_s9 = inlined_call_operand.vmem [shape: bf16[32,32], index: 9, kind: input, shape index: {}]   ;;  %s2791_s10 = inlined_call_operand.vmem [shape: f32[1,32], index: 10, kind: input, shape index: {}]   ;;  %s2792_s11 = inlined_call_operand.hbm [shape: f32[2,8,32], index: 11, kind: output, shape index: {0}]   ;;  %s2793_s12 = inlined_call_operand.hbm [shape: bf16[2,4,8,8], index: 12, kind: output, shape index: {1}]  }
   0x1   :  { %2821 = sst [smem:[#allocation33_spill]] %s2782_s1 }
   0x2   :  { %2822 = sst [smem:[#allocation34_spill]] %s2784_s3 }
   0x3   :  { %2823 = sst [smem:[#allocation35_spill]] %s2785_s4 }
   0x4   :  { %2824 = sst [smem:[#allocation36_spill]] %s2787_s6 }
   0x5   :  { %2825 = sst [smem:[#allocation37_spill]] %s2790_s9 }
   0x6   :  { %2826 = sst [smem:[#allocation38_spill]] %s2791_s10 }
   0x7   :  { %2827 = sst [smem:[#allocation39_spill]] %s2792_s11 }
   0x8   :  { %2828 = sst [smem:[#allocation40_spill]] %s2793_s12 }
   0x9   :  { %18 = vsyncpa [#allocation6], 0 }
   0xa   :  { %20 = vsyncpa [#allocation6 + $0x1], 0 }
   0xb   :  { %21 = vsyncpa [#allocation9], 0 }
   0xc   :  { %23 = vsyncpa [#allocation9 + $0x1], 0 }
   0xd   :  { %24 = vsyncpa [#allocation12], 0 }
   0xe   :  { %25 = vsyncpa [#allocation15], 0 }
   0xf   :  { %26 = vsyncpa [#allocation7], 0 }
  0x10   :  { %28 = vsyncpa [#allocation7 + $0x1], 0 }
  0x11   :  { %29 = vsyncpa [#allocation18], 0 }
  0x12   :  { %31 = vsyncpa [#allocation18 + $0x1], 0  ;;  %s2294_s21 = smov 0   ;;  %s2296_s22 = smov 0  }
  0x13   :  { %s2298_s23 = smov 0   ;;  %s2300_s24 = smov 0  }
  0x14   :  { %s2302_s25 = smov 0   ;;  %s2304_s26 = smov 0  }
  0x15 LB: > { %2829 = sst [smem:[#allocation25_spill]] %s2187_s21  ;;  %s2325_s27 = sadd.s32 4294967295, %s2207_s26   ;;  %s2207_s26 = sphi %s2304_s26, %s37_s26   ;;  %s2203_s25 = sphi %s2302_s25, %s2878_s25   ;;  %s2199_s24 = sphi %s2300_s24, %s2877_s24   ;;  %s2195_s23 = sphi %s2298_s23, %s2881_s23   ;;  %s2191_s22 = sphi %s2296_s22, %s2880_s22   ;;  %s2187_s21 = sphi %s2294_s21, %s2879_s21  }
  0x16   : > { %2830 = sst [smem:[#allocation26_spill]] %s2199_s24  ;;  %s1581_s28 = sadd.s32 4294967294, %s2207_s26  }
  0x17   : > { %2831 = sst [smem:[#allocation27_spill]] %s2203_s25  ;;  %p71_p0 = scmp.ne.s32.totalorder %s2191_s22, %s2187_s21 }
  0x18   : > { %2832 = sst [smem:[#allocation28_spill]] %s2207_s26  ;;  %p2797_p1 = scmp.eq.s32.totalorder %s2325_s27, 0 }
  0x19   : > { %p323_p3 = scmp.eq.s32.totalorder %s1581_s28, 1  ;;  %p1582_p5 = scmp.ge.s32.totalorder %s2207_s26, 1 }
  0x1a   : > { %p2334_p4 = por %p2797_p1, %p71_p0  ;;  %p358_p7 = scmp.lt.s32.totalorder %s2207_s26, 3 }
  0x1b   : > { %p2339_p6 = por %p323_p3, %p71_p0  ;;  %s2209_s14 = smov [#allocation11]  }
  0x1c   : > { %s2833_s29 = scalar_select %p2334_p4, 1, 0 }
  0x1d   : > { %s2834_s30 = scalar_select %p2339_p6, 1, 0 }
  0x1e   : > { %p2344_p8 = pnand %p1582_p5, %p358_p7  ;;  %s370_s15 = sshll.u32 %s2209_s14, 4  ;;  %s371_s15 = int_to_ptr.vmem [resolvable:$true] %s370_s15 }
  0x1f   : > { %2835 = sst [smem:[#allocation29_spill]] %s2834_s30  ;;  %s49_s17 = sadd.s32 1, %s2203_s25 }
  0x20   : > { %s2836_s13 = scalar_select %p2344_p8, 1, 0 }
  0x21   : > { %p1779_p9 = pneg %p2344_p8  ;;  %s2838_s3 = sld [smem:[#allocation34_spill]] }
  0x23   : > { %p2353_p11 = pnand %p1779_p9, %p2797_p1 }
  0x25   : > { %s2837_s16 = scalar_select %p2353_p11, 1, 0 }
  0x26   : > { %p2366_p13 = pneg %p2353_p11 }
  0x27   : > { %s1907_s20 = scalar_lea.hbm %s2838_s3, 256 }
  0x28   : > { %p1908_p12 = scmp.ne.s32.totalorder %s2838_s3, %s1907_s20  ;;  %p1914_p5 = scmp.lt.u32.totalorder %s1907_s20, %s2838_s3 }
  0x29   : > { %s2839_s14 = scalar_select %p2366_p13, 1, 0 }
  0x2a   : > { %p1910_p0 = pnand %p2366_p13, %p1908_p12 }
  0x2c   : > { %p1911_p3 = pneg %p1910_p0 }
  0x2e   : > { %p1916_p7 = pnand %p1914_p5, %p1911_p3 }
  0x30   : > { %1919 = shalt.err (!%p1916_p7)
}
  0x31   : > { %s1920_s18 = scalar_lea.vmem %s371_s15, 256  ;;  %p1928_p2 = scmp.lt.s32.totalorder %s371_s15, %s371_s15 }
  0x32   : > { %p1921_p9 = scmp.ne.s32.totalorder %s371_s15, %s1920_s18  ;;  %p1929_p6 = scmp.lt.s32.totalorder %s1920_s18, %s1920_s18 }
  0x34   : > { %p1923_p10 = pnand %p1921_p9, %p2366_p13  ;;  %p1930_p4 = por %p1929_p6, %p1928_p2 }
  0x36   : > { %p1924_p1 = pneg %p1923_p10 }
  0x38   : > { %p1931_p8 = pnand %p1930_p4, %p1924_p1 }
  0x3a   : > { %1934 = shalt.err (!%p1931_p8)
}
  0x3b   : > { %s2800_s30 = smov 64   ;;  %s2801_s11 = smov 4  }
  0x3c   : > { %1782 = dma.hbm_to_vmem [thread:$0]  (!%p2353_p11), %s2838_s3, 256, %s371_s15, [#allocation12], %s2800_s30, %s2800_s30, %s2801_s11  }
  0x3d   : > { %p51_p1 = scmp.ge.s32.totalorder %s49_s17, 2  ;;  %s58_s20 = sadd.s32 1, %s2195_s23 }
  0x3e   : > { %p65_p2 = scmp.ne.s32.totalorder %s2195_s23, %s2191_s22  ;;  %p66_p4 = scmp.eq.s32.totalorder %s2207_s26, 0 }
  0x3f   : > { %s2883_s17 = smov (%p51_p1, %s49_s17), 0  ;;  %p2841_p8 = scmp.eq.s32.totalorder %s2325_s27, 1 }
  0x40   : > { %2840 = sst [smem:[#allocation30_spill]] %s2883_s17  ;;  %p67_p6 = por %p66_p4, %p65_p2 }
  0x41   : > { %p2393_p10 = por %p2841_p8, %p65_p2  ;;  %s53_s18 = ssub.s32 %s2203_s25, %s2883_s17 }
  0x42   : > { %p1809_p12 = scmp.lt.s32.totalorder %s2207_s26, 2  ;;  %p56_p0 = scmp.eq.s32.totalorder %s53_s18, 0 }
  0x43   : > { %s2842_s28 = scalar_select %p2393_p10, 1, 0 }
  0x44   : > { %s2803_s10 = sand.u32 1, %s2195_s23   ;;  %s2406_s21 = sshll.u32 %s2203_s25, 7 }
  0x45   : > { %2843 = sst [smem:[#allocation31_spill]] %s2842_s28  ;;  %s2403_s15 = sshll.u32 %s2803_s10, 3 }
  0x46   : > { %s2409_s19 = scalar_select %p56_p0, %s2195_s23, %s58_s20  }
  0x47   : > { %p2411_p3 = pnand %p1809_p12, %p67_p6  ;;  %s442_s11 = sand.u32 1, %s2207_s26  }
  0x48   : > { %2844 = sst [smem:[#allocation32_spill]] %s2409_s19  ;;  %s2846_s1 = sld [smem:[#allocation33_spill]] }
  0x49   : > { %s2845_s30 = scalar_select %p2411_p3, 1, 0 }
  0x4a   : > { %s446_s10 = scalar_lea.vmem [#allocation8], %s2403_s15  ;;  %s2212_s20 = smov [#allocation13]  }
  0x4b   : > { %s453_s25 = sshll.u32 %s446_s10, 4  ;;  %s2425_s19 = sshll.u32 %s2212_s20, 4  ;;  %s2423_s25 = int_to_ptr.vmem [resolvable:$true] %s453_s25  ;;  %s393_s19 = int_to_ptr.vmem [resolvable:$true] %s2425_s19 }
  0x4c   : > { %s2427_s12 = scalar_lea.sflag [#allocation9], %s442_s11  ;;  %p2433_p7 = pneg %p2411_p3 }
  0x4e   : > { %s2420_s18 = scalar_lea.hbm %s2846_s1, %s2406_s21  ;;  %s1940_s26 = scalar_lea.hbm %s2846_s1, 256 }
  0x4f   : > { %s1935_s28 = scalar_lea.hbm %s2420_s18, 128  ;;  %p1941_p2 = scmp.lt.u32.totalorder %s2420_s18, %s2846_s1 }
  0x50   : > { %p1936_p5 = scmp.ne.s32.totalorder %s2420_s18, %s1935_s28  ;;  %p1942_p4 = scmp.lt.u32.totalorder %s1940_s26, %s1935_s28 }
  0x51   : > { %s2847_s3 = scalar_select %p2433_p7, 1, 0 }
  0x52   : > { %p1938_p9 = pnand %p2433_p7, %p1936_p5  ;;  %p1943_p6 = por %p1942_p4, %p1941_p2 }
  0x53   : > { %p1944_p8 = scmp.lt.u32.totalorder %s1935_s28, %s2420_s18 }
  0x54   : > { %p1939_p1 = pneg %p1938_p9 }
  0x55   : > { %p1945_p12 = por %p1944_p8, %p1943_p6 }
  0x57   : > { %p1946_p0 = pnand %p1945_p12, %p1939_p1 }
  0x59   : > { %1949 = shalt.err (!%p1946_p0)
}
  0x5a   : > { %s1950_s11 = scalar_lea.vmem %s2423_s25, 128  ;;  %s2213_s17 = smov [#allocation8]  }
  0x5b   : > { %p1951_p5 = scmp.ne.s32.totalorder %s2423_s25, %s1950_s11  ;;  %s1955_s10 = sshll.u32 %s2213_s17, 4  ;;  %s1956_s10 = int_to_ptr.vmem [resolvable:$false] %s1955_s10 }
  0x5c   : > { %s1957_s24 = scalar_lea.vmem %s1956_s10, 256  ;;  %p1958_p11 = scmp.lt.s32.totalorder %s2423_s25, %s1956_s10 }
  0x5d   : > { %p1953_p9 = pnand %p1951_p5, %p2433_p7  ;;  %p1959_p13 = scmp.lt.s32.totalorder %s1957_s24, %s1950_s11 }
  0x5f   : > { %p1954_p10 = pneg %p1953_p9  ;;  %p1960_p2 = por %p1959_p13, %p1958_p11 }
  0x61   : > { %p1961_p4 = pnand %p1960_p2, %p1954_p10 }
  0x63   : > { %1964 = shalt.err (!%p1961_p4)
}
  0x64   : > { %1795 = dma.hbm_to_vmem [thread:$0]  (!%p2411_p3), %s2420_s18, 128, %s2423_s25, %s2427_s12  }
  0x65   : > { %s1965_s20 = scalar_lea.hbm %s2788_s7, 256  ;;  %p2848_p11 = scmp.ne.s32.totalorder %s2839_s14, 0 }
  0x66   : > { %p1966_p1 = scmp.ne.s32.totalorder %s2788_s7, %s1965_s20  ;;  %p1972_p6 = scmp.lt.u32.totalorder %s1965_s20, %s2788_s7 }
  0x68   : > { %p1968_p13 = pnand %p1966_p1, %p2848_p11 }
  0x6a   : > { %p1969_p10 = pneg %p1968_p13 }
  0x6c   : > { %p1974_p8 = pnand %p1972_p6, %p1969_p10 }
  0x6e   : > { %1977 = shalt.err (!%p1974_p8)
}
  0x6f   : > { %s1978_s24 = scalar_lea.vmem %s393_s19, 256  ;;  %p1986_p9 = scmp.lt.s32.totalorder %s393_s19, %s393_s19 }
  0x70   : > { %p1979_p12 = scmp.ne.s32.totalorder %s393_s19, %s1978_s24  ;;  %p1987_p2 = scmp.lt.s32.totalorder %s1978_s24, %s1978_s24 }
  0x72   : > { %p1981_p0 = pnand %p1979_p12, %p2848_p11  ;;  %p1988_p4 = por %p1987_p2, %p1986_p9 }
  0x74   : > { %p1982_p5 = pneg %p1981_p0 }
  0x76   : > { %p1989_p3 = pnand %p1988_p4, %p1982_p5 }
  0x78   : > { %1992 = shalt.err (!%p1989_p3)
}
  0x79   : > { %p2849_p1 = scmp.ne.s32.totalorder %s2837_s16, 0  ;;  %s2850_s1 = smov 4  }
  0x7a   : > { %s2851_s25 = smov 64   ;;  %s2214_s28 = smov [#allocation14]  }
  0x7b   : > { %1785 = dma.hbm_to_vmem [thread:$0]  (!%p2849_p1), %s2788_s7, 256, %s393_s19, [#allocation12], %s2851_s25, %s2851_s25, %s2850_s1  }
  0x7c   : > { %s406_s20 = sshll.u32 %s2214_s28, 4  ;;  %s1993_s10 = scalar_lea.hbm %s2789_s8, 16  ;;  %s407_s20 = int_to_ptr.vmem [resolvable:$true] %s406_s20 }
  0x7d   : > { %p1994_p3 = scmp.ne.s32.totalorder %s2789_s8, %s1993_s10  ;;  %p2000_p6 = scmp.lt.u32.totalorder %s1993_s10, %s2789_s8 }
  0x7f   : > { %p1996_p13 = pnand %p1994_p3, %p2848_p11 }
  0x81   : > { %p1997_p10 = pneg %p1996_p13 }
  0x83   : > { %p2002_p8 = pnand %p2000_p6, %p1997_p10 }
  0x85   : > { %2005 = shalt.err (!%p2002_p8)
}
  0x86   : > { %s2006_s19 = scalar_lea.vmem %s407_s20, 16  ;;  %s2013_s1 = scalar_lea.vmem %s407_s20, 32 }
  0x87   : > { %p2007_p12 = scmp.ne.s32.totalorder %s407_s20, %s2006_s19  ;;  %p2014_p9 = scmp.lt.s32.totalorder %s407_s20, %s407_s20 }
  0x88   : > { %p2015_p2 = scmp.lt.s32.totalorder %s2013_s1, %s2006_s19 }
  0x89   : > { %p2009_p0 = pnand %p2007_p12, %p2848_p11 }
  0x8a   : > { %p2016_p4 = por %p2015_p2, %p2014_p9 }
  0x8b   : > { %p2010_p5 = pneg %p2009_p0 }
  0x8d   : > { %p2017_p7 = pnand %p2016_p4, %p2010_p5 }
  0x8f   : > { %2020 = shalt.err (!%p2017_p7)
}
  0x90   : > { %1788 = dma.hbm_to_vmem [thread:$0]  (!%p2849_p1), %s2789_s8, 16, %s407_s20, [#allocation15]  }
  0x91   : > { %s2501_s14 = scalar_lea.hbm %s2781_s0, %s2406_s21  ;;  %s427_s18 = scalar_lea.vmem [#allocation5], %s2403_s15 }
  0x92   : > { %s435_s26 = sshll.u32 %s427_s18, 4  ;;  %s2852_s16 = sand.u32 1, %s2195_s23   ;;  %s436_s26 = int_to_ptr.vmem [resolvable:$true] %s435_s26 }
  0x93   : > { %s424_s28 = scalar_lea.sflag [#allocation6], %s2852_s16  ;;  %s2021_s17 = scalar_lea.hbm %s2501_s14, 128 }
  0x94   : > { %p2022_p7 = scmp.ne.s32.totalorder %s2501_s14, %s2021_s17  ;;  %p2853_p11 = scmp.ne.s32.totalorder %s2847_s3, 0 }
  0x95   : > { %s2026_s10 = scalar_lea.hbm %s2781_s0, 256  ;;  %p2027_p1 = scmp.lt.u32.totalorder %s2501_s14, %s2781_s0 }
  0x96   : > { %p2024_p3 = pnand %p2022_p7, %p2853_p11  ;;  %p2028_p10 = scmp.lt.u32.totalorder %s2026_s10, %s2021_s17 }
  0x97   : > { %p2030_p8 = scmp.lt.u32.totalorder %s2021_s17, %s2501_s14 }
  0x98   : > { %p2025_p13 = pneg %p2024_p3  ;;  %p2029_p6 = por %p2028_p10, %p2027_p1 }
  0x9a   : > { %p2031_p12 = por %p2030_p8, %p2029_p6 }
  0x9c   : > { %p2032_p0 = pnand %p2031_p12, %p2025_p13 }
  0x9e   : > { %2035 = shalt.err (!%p2032_p0)
}
  0x9f   : > { %s2036_s1 = scalar_lea.vmem %s436_s26, 128  ;;  %s2215_s9 = smov [#allocation5]  }
  0xa0   : > { %p2037_p5 = scmp.ne.s32.totalorder %s436_s26, %s2036_s1  ;;  %s2041_s25 = sshll.u32 %s2215_s9, 4  ;;  %s2042_s25 = int_to_ptr.vmem [resolvable:$false] %s2041_s25 }
  0xa1   : > { %s2043_s4 = scalar_lea.vmem %s2042_s25, 256  ;;  %p2044_p4 = scmp.lt.s32.totalorder %s436_s26, %s2042_s25 }
  0xa2   : > { %p2039_p9 = pnand %p2037_p5, %p2853_p11  ;;  %p2045_p7 = scmp.lt.s32.totalorder %s2043_s4, %s2036_s1 }
  0xa4   : > { %p2040_p2 = pneg %p2039_p9  ;;  %p2046_p3 = por %p2045_p7, %p2044_p4 }
  0xa6   : > { %p2047_p1 = pnand %p2046_p3, %p2040_p2 }
  0xa8   : > { %2050 = shalt.err (!%p2047_p1)
}
  0xa9   : > { %p2854_p10 = scmp.ne.s32.totalorder %s2845_s30, 0  ;;  %s2527_s16 = scalar_lea.hbm %s2783_s2, %s2406_s21 }
  0xaa   : > { %s464_s17 = scalar_lea.vmem [#allocation10], %s2403_s15  ;;  %s2051_s11 = scalar_lea.hbm %s2527_s16, 128 }
  0xab   : > { %1792 = dma.hbm_to_vmem [thread:$0]  (!%p2854_p10), %s2501_s14, 128, %s436_s26, %s424_s28  }
  0xac   : > { %s471_s20 = sshll.u32 %s464_s17, 4  ;;  %p2052_p13 = scmp.ne.s32.totalorder %s2527_s16, %s2051_s11  ;;  %s472_s20 = int_to_ptr.vmem [resolvable:$true] %s471_s20 }
  0xad   : > { %s2056_s14 = scalar_lea.hbm %s2783_s2, 256  ;;  %p2057_p12 = scmp.lt.u32.totalorder %s2527_s16, %s2783_s2 }
  0xae   : > { %p2054_p6 = pnand %p2052_p13, %p2853_p11  ;;  %p2058_p0 = scmp.lt.u32.totalorder %s2056_s14, %s2051_s11 }
  0xaf   : > { %p2060_p9 = scmp.lt.u32.totalorder %s2051_s11, %s2527_s16 }
  0xb0   : > { %p2055_p8 = pneg %p2054_p6  ;;  %p2059_p5 = por %p2058_p0, %p2057_p12 }
  0xb2   : > { %p2061_p2 = por %p2060_p9, %p2059_p5 }
  0xb4   : > { %p2062_p4 = pnand %p2061_p2, %p2055_p8 }
  0xb6   : > { %2065 = shalt.err (!%p2062_p4)
}
  0xb7   : > { %s2066_s15 = scalar_lea.vmem %s472_s20, 128  ;;  %s2216_s21 = smov [#allocation10]  }
  0xb8   : > { %p2067_p7 = scmp.ne.s32.totalorder %s472_s20, %s2066_s15  ;;  %s2071_s19 = sshll.u32 %s2216_s21, 4  ;;  %s2072_s19 = int_to_ptr.vmem [resolvable:$false] %s2071_s19 }
  0xb9   : > { %s2073_s1 = scalar_lea.vmem %s2072_s19, 256  ;;  %p2074_p13 = scmp.lt.s32.totalorder %s472_s20, %s2072_s19 }
  0xba   : > { %p2069_p3 = pnand %p2067_p7, %p2853_p11  ;;  %p2075_p6 = scmp.lt.s32.totalorder %s2073_s1, %s2066_s15 }
  0xbc   : > { %p2070_p1 = pneg %p2069_p3  ;;  %p2076_p10 = por %p2075_p6, %p2074_p13 }
  0xbe   : > { %p2077_p0 = pnand %p2076_p10, %p2070_p1 }
  0xc0   : > { %2080 = shalt.err (!%p2077_p0)
}
  0xc1   : > { %p2855_p12 = scmp.ne.s32.totalorder %s2845_s30, 0  ;;  %p2856_p8 = scmp.ne.s32.totalorder %s2836_s13, 0 }
  0xc2   : > { %s2551_s3 = sand.u32 (!%p2856_p8), 1, %s2191_s22   ;;  %p2857_p11 = scmp.ne.s32.totalorder (!%p2856_p8), %s2833_s29, 0 }
  0xc3   : > { %1798 = dma.hbm_to_vmem [thread:$0]  (!%p2855_p12), %s2527_s16, 128, %s472_s20, %s2427_s12  }
  0xc4   : > { %480 = sbr.rel (%p2856_p8) target bundleno = 1683 (0x693), region = 64  ;;  %s2554_s9 = sshll.u32 (!%p2856_p8), %s2551_s3, 3 }
  0xc5   : > { %s483_s25 = scalar_lea.sflag (!%p2856_p8), [#allocation6], %s2551_s3  ;;  %s486_s4 = scalar_lea.vmem (!%p2856_p8), [#allocation5], %s2554_s9 }
  0xcb   : > { %2162 = dma.done.wait (%p2857_p11), %s483_s25, 128  }
  0xcc   : > { %2164 = vsyncadd (%p2857_p11), %s483_s25, 4294967168  ;;  %s491_s12 = sand.u32 1, %s2325_s27   ;;  %s495_s30 = scalar_lea.vmem [#allocation8], %s2554_s9 }
  0xcd   : > { %s492_s13 = scalar_lea.sflag [#allocation9], %s491_s12 }
  0xce   : > { %2166 = dma.done.wait (%p2857_p11), %s492_s13, 256  }
  0xcf   : > { %2168 = vsyncadd (%p2857_p11), %s492_s13, 4294967040  ;;  %s504_s6 = scalar_lea.vmem [#allocation10], %s2554_s9  ;;  %p2858_p10 = scmp.eq.s32.totalorder %s2325_s27, 0 }
  0xd1   : > { %2170 = dma.done.wait (%p2858_p10), [#allocation12], 512   ;;  %p2859_p5 = pmov %p2858_p10 }
  0xd3   : > { %2172 = vsyncadd (%p2859_p5), [#allocation12], 4294966784  ;;  %p2860_p9 = pmov %p2859_p5 }
  0xd4   : > { %p2861_p2 = pmov %p2859_p5 }
  0xd5   : > { %2174 = dma.done.wait (%p2860_p9), [#allocation15], 16  }
  0xd6   : > { %2176 = vsyncadd (%p2861_p2), [#allocation15], 4294967280  ;;  %v2217_v0 = vmov 0.0   ;;  %vm2218_vm0 = vmmov 0   ;;  %v1877_v1 = vld [vmem:[%s2786_s5] sm:$0xff]   ;;  %v1878_v2 = vld [vmem:[%s2786_s5 + $0x8] sm:$0xff]  }
  0xd7   : > { %1677 = vmatprep.subr.bf16.mxu0 %v2217_v0  ;;  %1681 = vmatprep.mubr.msk.bf16.mxu0 %vm2218_vm0, %v2217_v0  ;;  %v577_v3 = vld [vmem:[%s495_s30] sm:$0xff]  ;;  %vm604_vm1 = vcmask 261120   ;;  %v719_v7 = vld [vmem:[%s486_s4] sm:$0xff]  ;;  %s2862_s11 = sld [smem:[#allocation36_spill]]  ;;  %vm649_vm2 = vcmask 257024   ;;  %s2863_s14 = sld [smem:[#allocation35_spill]] }
  0xd8   : > { %1685 = vmatprep.subr.bf16.mxu1 %v2217_v0  ;;  %1689 = vmatprep.mubr.msk.bf16.mxu1 %vm2218_vm0, %v2217_v0  ;;  %v1879_v4 = vld [vmem:[#allocation11] sm:$0xff]   ;;  %v578_v5 = vpack.c.bf16 %v577_v3, %v577_v3  ;;  %v1880_v6 = vld [vmem:[#allocation11 + $0x8] sm:$0xff]   ;;  %v720_v8 = vpack.c.bf16 %v719_v7, %v719_v7  ;;  %v1881_v9 = vld [vmem:[#allocation13] sm:$0xff]   ;;  %vm791_vm3 = vcmask 64512   ;;  %s2219_s26 = smov 112   ;;  %s2220_s28 = smov 120  }
  0xd9   : > { %1678 = vmatpush3.bf16.msra.mxu0 %v1877_v1  ;;  %1686 = vmatpush3.bf16.msra.mxu1 %v1881_v9  ;;  %v1882_v10 = vld [vmem:[#allocation13 + $0x8] sm:$0xff]   ;;  %s2221_s15 = smov 104   ;;  %v1606_v32 = vld [vmem:[#allocation14] ss:$0 sm:$0xff]  ;;  %vm855_vm4 = vcmask 1043456   ;;  %s1601_s21 = sshll.u32 %s2551_s3, 4 }
  0xda   : > { %1679 = vmatprep.subr.bf16.mxu0 %v2217_v0  ;;  %1687 = vmatprep.subr.bf16.mxu1 %v2217_v0  ;;  %v579_v11 = vld [vmem:[%s504_s6] sm:$0xff]  ;;  %vm850_vm5 = vcmask 60416   ;;  %s2658_s19 = scalar_lea.vmem [#allocation17], %s1601_s21  ;;  %s2222_s1 = smov 8   ;;  %vm1029_vm6 = vcmask 126016   ;;  %vm1158_vm7 = vcmask 191616  }
  0xdb   : > { %v580_v12 = vpack.c.bf16 %v579_v11, %v579_v11  ;;  %s2864_s12 = sld [smem:[#allocation37_spill]]  ;;  %s2223_s6 = smov 16   ;;  %vm1287_vm8 = vcmask 257216  }
  0xdc   : > { %s2865_s29 = sld [smem:[#allocation26_spill]]  ;;  %s2224_s18 = smov 24  }
  0xdd   : > { %1680 = vmatpush3.bf16.msra.mxu0 %v1878_v2  ;;  %1688 = vmatpush3.bf16.msra.mxu1 %v1882_v10  ;;  %v1602_v13 = vld [vmem:[%s2862_s11] ss:$0 sm:$0xff]  ;;  %s2866_s16 = sld [smem:[#allocation31_spill]]  ;;  %s1391_s17 = sshll.u32 %s2658_s19, 4  ;;  %s2697_s17 = int_to_ptr.vmem [resolvable:$true] %s1391_s17 }
  0xde   : > { %1693 = vmatprep.subr.bf16.mxu0 %v2217_v0  ;;  %1701 = vmatprep.subr.bf16.mxu1 %v2217_v0  ;;  %v1610_v20 = vld [vmem:[%s2863_s14] ss:$0 sm:$0xff]  ;;  %s2867_s10 = sld [smem:[#allocation40_spill]]  ;;  %s1363_s14 = scalar_lea.sflag [#allocation18], %s2551_s3 }
  0xe0   : > { %1682 = vmatmul.mubr.msk.bf16.vlgmr.msra.gmra.mrb[0].mxu0 %vm604_vm1, %v578_v5  ;;  %1690 = vmatmul.mubr.msk.bf16.vlgmr.msra.gmra.mrb[0].mxu1 %vm604_vm1, %v580_v12 }
  0xe1   : > { %1694 = vmatpush3.bf16.msra.mxu0 %v1879_v4  ;;  %1697 = vmatprep.mubr.msk.bf16.mxu0 %vm2218_vm0, %v2217_v0 }
  0xe2   : > { %1695 = vmatprep.subr.bf16.mxu0 %v2217_v0  ;;  %1703 = vmatprep.mubr.msk.bf16.mxu1 %vm2218_vm0, %v2217_v0  ;;  %s1648_s27 = sshll.u32 %s2865_s29, 8 }
  0xe3   : > { %p2868_p7 = scmp.ne.s32.totalorder %s2866_s16, 0 }
  0xe4   : > { %s2695_s24 = scalar_lea.hbm %s2867_s10, %s1648_s27 }
  0xe5   : > { %1696 = vmatpush3.bf16.msra.mxu0 %v1880_v6 }
  0xe6   : > { %1707 = vmatprep.subr.bf16.mxu0 %v2217_v0 }
  0xe8   : > { %1698 = vmatmul.mubr.msk.bf16.vlgmr.msra.gmra.mrb[4].mxu0 %vm604_vm1, %v720_v8 }
  0xe9   : > { %1709 = vmatprep.mubr.msk.bf16.mxu0 %vm2218_vm0, %v2217_v0 }
 0x1b3   : > { %v642_v14 = vpop.f32.mrb[0].mxu0  ;;  %v711_v33 = vpop.f32.mrb[0].mxu1 }
 0x1b4   : > { %v643_v15 = vadd.f32 %v1602_v13, %v642_v14  ;;  %v1683_v16 = vpop.f32.mrb[1].mxu0  ;;  %v712_v34 = vadd.f32 %v1606_v32, %v711_v33  ;;  %v1691_v35 = vpop.f32.mrb[1].mxu1 }
 0x1b5   : > { %v645_v17 = vpop.f32.mrb[2].mxu0  ;;  %v714_v36 = vpop.f32.mrb[2].mxu1 }
 0x1b6   : > { %v648_v18 = vpack.c.bf16 %v643_v15, %v643_v15  ;;  %v1684_v19 = vpop.f32.mrb[3].mxu0  ;;  %v717_v37 = vpack.c.bf16 %v712_v34, %v712_v34  ;;  %v1692_v38 = vpop.f32.mrb[3].mxu1 }
 0x1b8   : > { %650 = vst.msk [vmem:[#allocation2] sm:$0xf] %vm649_vm2, %v648_v18  ;;  %718 = vst.msk [vmem:[#allocation3] sm:$0xf] %vm649_vm2, %v717_v37 }
 0x1bb   : > { %v782_v21 = vpop.f32.mrb[4].mxu0 }
 0x1bc   : > { %v1699_v22 = vpop.f32.mrb[5].mxu0  ;;  %v783_v23 = vadd.f32 %v1610_v20, %v782_v21 }
 0x1bd   : > { %v785_v24 = vpop.f32.mrb[6].mxu0 }
 0x1be   : > { %v1700_v25 = vpop.f32.mrb[7].mxu0  ;;  %v788_v30 = vpack.c.bf16 %v783_v23, %v783_v23 }
 0x1bf   : > { %v789_v26 = vld [vmem:[#allocation2] sm:$0xf]  ;;  %v790_v39 = vld [vmem:[#allocation3] sm:$0xf] }
 0x1c0   : > { %v1883_v27 = vld [vmem:[#allocation2] ss:$0 sps:$4 sm:$0xff]   ;;  %v796_v28 = vsel %vm791_vm3, %v789_v26, 0  ;;  %v857_v40 = vsel %vm855_vm4, %v790_v39, 0  ;;  %v1886_v12 = vld [vmem:[#allocation3] ss:$0 sps:$4 sm:$0xff]  }
 0x1c1   : > { %v1884_v29 = vld [vmem:[#allocation2] ss:$0 sps:$4 sm:$0xff]   ;;  %1702 = vmatpush3.bf16.xpose.msra.mxu1 %v796_v28  ;;  %1038 = vrot.lane.b32.xlu1 %v1883_v27, %s2219_s26  ;;  %v1887_v28 = vld [vmem:[#allocation3] ss:$0 sps:$4 sm:$0xff]  }
 0x1c2   : > { %909 = vrot.lane.b32.xlu0 %v1884_v29, %s2220_s28  ;;  %1713 = vmatprep.subr.bf16.mxu1 %v2217_v0  ;;  %v1885_v31 = vld [vmem:[#allocation2] ss:$0 sps:$4 sm:$0xff]   ;;  %v1888_v32 = vld [vmem:[#allocation3] ss:$0 sps:$4 sm:$0xff]  }
 0x1c3   : > { %1708 = vmatpush3.bf16.msra.mxu0 %v857_v40 }
 0x1c4   : > { %1719 = vmatprep.subr.bf16.mxu0 %v2217_v0 }
 0x1c5   : > { %1033 = vrot.lane.b32.xlu1 %v788_v30, %s2219_s26 }
 0x1c6   : > { %904 = vrot.lane.b32.xlu0 %v788_v30, %s2220_s28 }
 0x1c8   : > { %1704 = vmatmul.mubr.msk.bf16.vlgmr.msra.gmra.mrb[4].mxu1 %vm791_vm3, %v788_v30 }
 0x1c9   : > { %1162 = vrot.lane.b32.xlu1 %v788_v30, %s2221_s15  ;;  %1715 = vmatprep.mubr.msk.bf16.mxu1 %vm2218_vm0, %v2217_v0 }
 0x1ca   : > { %1167 = vrot.lane.b32.xlu0 %v1885_v31, %s2221_s15 }
 0x233   : > { %v1039_v43 = vpop.permute.xlu1 %1038 }
 0x234   : > { %v910_v41 = vpop.permute.xlu0 %909  ;;  %v1044_v45 = vsel %vm791_vm3, %v1039_v43, 0 }
 0x235   : > { %v915_v42 = vsel %vm791_vm3, %v910_v41, 0 }
 0x236   : > { %1714 = vmatpush3.bf16.xpose.msra.mxu1 %v915_v42 }
 0x237   : > { %1725 = vmatprep.subr.bf16.mxu1 %v2217_v0  ;;  %v1034_v47 = vpop.permute.xlu1 %1033 }
 0x238   : > { %v905_v44 = vpop.permute.xlu0 %904 }
 0x23b   : > { %v1163_v49 = vpop.permute.xlu1 %1162 }
 0x23c   : > { %v1168_v46 = vpop.permute.xlu0 %1167 }
 0x23d   : > { %1716 = vmatmul.mubr.msk.bf16.vlgmr.msra.gmra.mrb[8].mxu1 %vm791_vm3, %v905_v44  ;;  %v1173_v48 = vsel %vm791_vm3, %v1168_v46, 0 }
 0x23e   : > { %1726 = vmatpush3.bf16.xpose.msra.mxu1 %v1044_v45  ;;  %1727 = vmatprep.mubr.msk.bf16.mxu1 %vm2218_vm0, %v2217_v0 }
 0x23f   : > { %1737 = vmatprep.subr.bf16.mxu1 %v2217_v0 }
 0x245   : > { %1728 = vmatmul.mubr.msk.bf16.vlgmr.msra.gmra.mrb[12].mxu1 %vm791_vm3, %v1034_v47 }
 0x246   : > { %1738 = vmatpush3.bf16.xpose.msra.mxu1 %v1173_v48  ;;  %1739 = vmatprep.mubr.msk.bf16.mxu1 %vm2218_vm0, %v2217_v0 }
 0x247   : > { %1749 = vmatprep.subr.bf16.mxu1 %v2217_v0 }
 0x24d   : > { %1740 = vmatmul.mubr.msk.bf16.vlgmr.msra.gmra.mrb[16].mxu1 %vm791_vm3, %v1163_v49 }
 0x24e   : > { %1753 = vmatprep.mubr.msk.bf16.mxu1 %vm2218_vm0, %v2217_v0 }
 0x29b   : > { %v832_v50 = vpop.f32.mrb[4].mxu1 }
 0x29c   : > { %v1705_v51 = vpop.f32.mrb[5].mxu1  ;;  %v838_v52 = vsel %vm791_vm3, %v832_v50, -inf }
 0x29d   : > { %839 = vmax.xlane.f32.xlu0 %v838_v52  ;;  %v835_v53 = vpop.f32.mrb[6].mxu1 }
 0x29e   : > { %v1706_v54 = vpop.f32.mrb[7].mxu1 }
 0x310   : > { %v951_v55 = vpop.f32.mrb[8].mxu1 }
 0x311   : > { %v1717_v56 = vpop.f32.mrb[9].mxu1  ;;  %v957_v57 = vsel %vm791_vm3, %v951_v55, -inf }
 0x312   : > { %958 = vmax.xlane.f32.xlu1 %v957_v57  ;;  %v954_v58 = vpop.f32.mrb[10].mxu1 }
 0x313   : > { %v1718_v59 = vpop.f32.mrb[11].mxu1 }
 0x318   : > { %v1080_v60 = vpop.f32.mrb[12].mxu1 }
 0x319   : > { %v1729_v61 = vpop.f32.mrb[13].mxu1  ;;  %v1086_v62 = vsel %vm791_vm3, %v1080_v60, -inf }
 0x31a   : > { %1087 = vmax.xlane.f32.xlu0 %v1086_v62  ;;  %v1083_v63 = vpop.f32.mrb[14].mxu1  ;;  %v1889_v62 = vld [vmem:[%s2864_s12] sm:$0xff]  }
 0x31b   : > { %v1730_v1 = vpop.f32.mrb[15].mxu1  ;;  %1750 = vmatpush3.bf16.msra.mxu1 %v1889_v62 }
 0x31c   : > { %v1890_v1 = vld [vmem:[%s2864_s12 + $0x8] sm:$0xff]   ;;  %1751 = vmatprep.subr.bf16.mxu1 %v2217_v0 }
 0x31f   : > { %1752 = vmatpush3.bf16.msra.mxu1 %v1890_v1 }
 0x320   : > { %v1209_v2 = vpop.f32.mrb[16].mxu1 }
 0x321   : > { %v1741_v3 = vpop.f32.mrb[17].mxu1  ;;  %v1215_v4 = vsel %vm791_vm3, %v1209_v2, -inf }
 0x322   : > { %1216 = vmax.xlane.f32.xlu0 %v1215_v4  ;;  %v1212_v5 = vpop.f32.mrb[18].mxu1 }
 0x323   : > { %v1742_v6 = vpop.f32.mrb[19].mxu1 }
 0x32a   : > { %v840_v7 = vpop.xlane.xlu0 %839 }
 0x32b   : > { %v841_v8 = vsub.f32 %v832_v50, %v840_v7 }
 0x32d   : > { %v842_v9 = vmul.f32 1.442695, %v841_v8 }
 0x32f   : > { %1891 = vpow2.f32 %v842_v9 }
 0x339   : > { %v1892_v10 = vpop.eup %1891 }
 0x33a   : > { %v844_v11 = vsel %vm791_vm3, %v1892_v10, 0.0 }
 0x33b   : > { %845 = vadd.xlane.f32.xlu1 %v844_v11 }
 0x34c   : > { %974 = vrot.lane.b32.xlu1 %v1886_v12, %s2220_s28  ;;  %s2225_s28 = smov [#allocation17]  }
 0x39f   : > { %v959_v13 = vpop.xlane.xlu1 %958 }
 0x3a0   : > { %v960_v14 = vsub.f32 %v951_v55, %v959_v13 }
 0x3a2   : > { %v961_v15 = vmul.f32 1.442695, %v960_v14 }
 0x3a4   : > { %1893 = vpow2.f32 %v961_v15 }
 0x3a7   : > { %v1088_v16 = vpop.xlane.xlu0 %1087 }
 0x3a8   : > { %v1089_v17 = vsub.f32 %v1080_v60, %v1088_v16 }
 0x3aa   : > { %v1090_v18 = vmul.f32 1.442695, %v1089_v17 }
 0x3ac   : > { %1895 = vpow2.f32 %v1090_v18 }
 0x3ae   : > { %v1894_v19 = vpop.eup %1893 }
 0x3af   : > { %v1217_v20 = vpop.xlane.xlu0 %1216  ;;  %v963_v21 = vsel %vm791_vm3, %v1894_v19, 0.0 }
 0x3b0   : > { %v1218_v22 = vsub.f32 %v1209_v2, %v1217_v20  ;;  %964 = vadd.xlane.f32.xlu0 %v963_v21 }
 0x3b2   : > { %v1219_v23 = vmul.f32 1.442695, %v1218_v22 }
 0x3b4   : > { %1897 = vpow2.f32 %v1219_v23 }
 0x3b6   : > { %v1896_v24 = vpop.eup %1895 }
 0x3b7   : > { %v1092_v25 = vsel %vm791_vm3, %v1896_v24, 0.0 }
 0x3b8   : > { %1093 = vadd.xlane.f32.xlu1 %v1092_v25 }
 0x3be   : > { %v1898_v26 = vpop.eup %1897 }
 0x3bf   : > { %v1221_v27 = vsel %vm791_vm3, %v1898_v26, 0.0 }
 0x3c0   : > { %1222 = vadd.xlane.f32.xlu0 %v1221_v27 }
 0x3c8   : > { %v846_v29 = vpop.xlane.xlu1 %845 }
 0x3c9   : > { %1899 = vrcp.f32 %v846_v29  ;;  %1232 = vrot.lane.b32.xlu1 %v1887_v28, %s2221_s15  ;;  %s2085_s15 = sshll.u32 %s2225_s28, 4  ;;  %s2086_s15 = int_to_ptr.vmem [resolvable:$false] %s2085_s15 }
 0x3ca   : > { %s2087_s21 = scalar_lea.vmem %s2086_s15, 512  ;;  %p2088_p13 = scmp.lt.s32.totalorder %s2697_s17, %s2086_s15 }
 0x3cc   : > { %v975_v33 = vpop.permute.xlu1 %974 }
 0x3cd   : > { %v980_v35 = vsel %vm855_vm4, %v975_v33, 0 }
 0x3d3   : > { %v1900_v30 = vpop.eup %1899 }
 0x3d4   : > { %v848_v31 = vmul.f32 %v1900_v30, %v1892_v10 }
 0x3d6   : > { %1103 = vrot.lane.b32.xlu0 %v1888_v32, %s2219_s26  ;;  %v849_v34 = vpack.c.bf16 %v848_v31, %v848_v31  ;;  %s2081_s26 = scalar_lea.vmem %s2697_s17, 256 }
 0x3d7   : > { %p2082_p4 = scmp.ne.s32.totalorder %s2697_s17, %s2081_s26  ;;  %p2089_p6 = scmp.lt.s32.totalorder %s2087_s21, %s2081_s26 }
 0x3d8   : > { %1710 = vmatmul.mubr.msk.bf16.vlgmr.msra.gmra.mrb[8].mxu0 %vm791_vm3, %v849_v34  ;;  %851 = vst.msk [vmem:[%s2658_s19] sm:$0xf] %vm850_vm5, %v849_v34 }
 0x3d9   : > { %1720 = vmatpush3.bf16.msra.mxu0 %v980_v35  ;;  %1721 = vmatprep.mubr.msk.bf16.mxu0 %vm2218_vm0, %v2217_v0  ;;  %p2083_p3 = pnand %p2082_p4, %p2868_p7  ;;  %p2090_p0 = por %p2089_p6, %p2088_p13 }
 0x3da   : > { %1731 = vmatprep.subr.bf16.mxu0 %v2217_v0 }
 0x3db   : > { %p2084_p1 = pneg %p2083_p3 }
 0x3dd   : > { %p2091_p12 = pnand %p2090_p0, %p2084_p1 }
 0x43d   : > { %v965_v36 = vpop.xlane.xlu0 %964 }
 0x43e   : > { %1901 = vrcp.f32 %v965_v36 }
 0x445   : > { %v1094_v37 = vpop.xlane.xlu1 %1093 }
 0x446   : > { %1903 = vrcp.f32 %v1094_v37 }
 0x448   : > { %v1902_v38 = vpop.eup %1901 }
 0x449   : > { %v967_v39 = vmul.f32 %v1902_v38, %v1894_v19  ;;  %v1233_v46 = vpop.permute.xlu1 %1232 }
 0x44a   : > { %v1238_v48 = vsel %vm855_vm4, %v1233_v46, 0 }
 0x44b   : > { %v968_v40 = vpack.c.bf16 %v967_v39, %v967_v39 }
 0x44d   : > { %1722 = vmatmul.mubr.msk.bf16.vlgmr.msra.gmra.mrb[12].mxu0 %vm791_vm3, %v968_v40  ;;  %v1223_v41 = vpop.xlane.xlu0 %1222  ;;  %1618 = vst.msk [vmem:[%s2658_s19 + $0x4] sm:$0xf] %vm850_vm5, %v968_v40 }
 0x44e   : > { %1905 = vrcp.f32 %v1223_v41  ;;  %1733 = vmatprep.mubr.msk.bf16.mxu0 %vm2218_vm0, %v2217_v0 }
 0x450   : > { %v1904_v42 = vpop.eup %1903 }
 0x451   : > { %v1096_v43 = vmul.f32 %v1904_v42, %v1896_v24  ;;  %v1104_v44 = vpop.permute.xlu0 %1103 }
 0x452   : > { %v1109_v45 = vsel %vm855_vm4, %v1104_v44, 0 }
 0x453   : > { %1732 = vmatpush3.bf16.msra.mxu0 %v1109_v45  ;;  %v1097_v47 = vpack.c.bf16 %v1096_v43, %v1096_v43 }
 0x454   : > { %1743 = vmatprep.subr.bf16.mxu0 %v2217_v0 }
 0x455   : > { %1624 = vst.msk [vmem:[%s2658_s19 + $0x8] sm:$0xf] %vm850_vm5, %v1097_v47 }
 0x456   : > { %1734 = vmatmul.mubr.msk.bf16.vlgmr.msra.gmra.mrb[16].mxu0 %vm791_vm3, %v1097_v47 }
 0x457   : > { %1744 = vmatpush3.bf16.msra.mxu0 %v1238_v48  ;;  %1745 = vmatprep.mubr.msk.bf16.mxu0 %vm2218_vm0, %v2217_v0 }
 0x458   : > { %v1906_v49 = vpop.eup %1905 }
 0x459   : > { %v1225_v50 = vmul.f32 %v1906_v49, %v1898_v26 }
 0x45b   : > { %v1226_v51 = vpack.c.bf16 %v1225_v50, %v1225_v50 }
 0x45d   : > { %1630 = vst.msk [vmem:[%s2658_s19 + $0xc] sm:$0xf] %vm850_vm5, %v1226_v51 }
 0x45e   : > { %1746 = vmatmul.mubr.msk.bf16.vlgmr.msra.gmra.mrb[20].mxu0 %vm791_vm3, %v1226_v51 }
 0x4ab   : > { %v893_v52 = vpop.f32.mrb[8].mxu0 }
 0x4ac   : > { %v899_v53 = vpack.c.bf16 %v893_v52, %v893_v52  ;;  %v1711_v54 = vpop.f32.mrb[9].mxu0 }
 0x4ad   : > { %v896_v55 = vpop.f32.mrb[10].mxu0 }
 0x4ae   : > { %900 = vst.msk [vmem:[#allocation4] sm:$0xf] %vm850_vm5, %v899_v53  ;;  %v1712_v56 = vpop.f32.mrb[11].mxu0 }
 0x520   : > { %v1016_v57 = vpop.f32.mrb[12].mxu0 }
 0x521   : > { %v1645_v58 = vpack.c.bf16 %v1016_v57, %v1016_v57  ;;  %v1723_v59 = vpop.f32.mrb[13].mxu0 }
 0x522   : > { %v1019_v60 = vpop.f32.mrb[14].mxu0 }
 0x523   : > { %1026 = vrot.lane.b32.xlu1 %v1645_v58, %s2222_s1  ;;  %v1724_v61 = vpop.f32.mrb[15].mxu0 }
 0x529   : > { %v1145_v63 = vpop.f32.mrb[16].mxu0 }
 0x52a   : > { %v1646_v2 = vpack.c.bf16 %v1145_v63, %v1145_v63  ;;  %v1735_v3 = vpop.f32.mrb[17].mxu0 }
 0x52b   : > { %v1148_v4 = vpop.f32.mrb[18].mxu0 }
 0x52c   : > { %1155 = vrot.lane.b32.xlu0 %v1646_v2, %s2223_s6  ;;  %v1736_v5 = vpop.f32.mrb[19].mxu0 }
 0x531   : > { %v1274_v6 = vpop.f32.mrb[20].mxu0 }
 0x532   : > { %v1647_v7 = vpack.c.bf16 %v1274_v6, %v1274_v6  ;;  %v1747_v8 = vpop.f32.mrb[21].mxu0 }
 0x533   : > { %v1277_v9 = vpop.f32.mrb[22].mxu0 }
 0x534   : > { %1284 = vrot.lane.b32.xlu1 %v1647_v7, %s2224_s18  ;;  %v1748_v10 = vpop.f32.mrb[23].mxu0 }
 0x595   : > { %v1027_v11 = vpop.permute.xlu1 %1026 }
 0x596   : > { %1030 = vst.msk [vmem:[#allocation4] sm:$0xf] %vm1029_vm6, %v1027_v11 }
 0x59e   : > { %v1156_v0 = vpop.permute.xlu0 %1155 }
 0x59f   : > { %1159 = vst.msk [vmem:[#allocation4] sm:$0xf] %vm1158_vm7, %v1156_v0 }
 0x5a6   : > { %v1285_v12 = vpop.permute.xlu1 %1284 }
 0x5a7   : > { %1288 = vst.msk [vmem:[#allocation4] sm:$0xf] %vm1287_vm8, %v1285_v12 }
 0x5ae   : > { %v1289_v13 = vld [vmem:[#allocation4] sm:$0xf] }
 0x5af   : > { %1754 = vmatmul.mubr.msk.bf16.vlgmr.msra.gmra.mrb[20].mxu1 %vm604_vm1, %v1289_v13 }
 0x5b0   : > { %2094 = shalt.err (!%p2091_p12)
}
 0x5b1   : > { %s2095_s19 = scalar_lea.hbm %s2695_s24, 256  ;;  %s2099_s4 = scalar_lea.hbm %s2867_s10, 512 }
 0x5b2   : > { %p2096_p8 = scmp.ne.s32.totalorder %s2695_s24, %s2095_s19  ;;  %p2100_p5 = scmp.lt.u32.totalorder %s2695_s24, %s2867_s10 }
 0x5b3   : > { %p2101_p9 = scmp.lt.u32.totalorder %s2099_s4, %s2095_s19  ;;  %p2103_p4 = scmp.lt.u32.totalorder %s2095_s19, %s2695_s24 }
 0x5b4   : > { %p2097_p11 = pnand %p2096_p8, %p2868_p7 }
 0x5b5   : > { %p2102_p2 = por %p2101_p9, %p2100_p5 }
 0x5b6   : > { %p2098_p10 = pneg %p2097_p11 }
 0x5b7   : > { %p2104_p3 = por %p2103_p4, %p2102_p2 }
 0x5b9   : > { %p2105_p1 = pnand %p2104_p3, %p2098_p10 }
 0x5bb   : > { %2108 = shalt.err (!%p2105_p1)
}
 0x5bc   : > { %s2226_s6 = smov 64   ;;  %s2227_s18 = smov 4  }
 0x5bd   : > { %1776 = dma.vmem_to_hbm [thread:$0]  (%p2868_p7), %s2697_s17, 256, %s2695_s24, %s1363_s14, %s2226_s6, %s2226_s6, %s2227_s18  }
 0x5be   : > { %s2869_s11 = sld [smem:[#allocation38_spill]]  ;;  %s1640_s26 = sshll.u32 %s2865_s29, 7 }
 0x5bf   : > { %s564_s28 = scalar_lea.vmem [#allocation16], %s2554_s9  ;;  %s2870_s1 = sld [smem:[#allocation39_spill]] }
 0x5c0   : > { %s1377_s15 = sshll.u32 %s564_s28, 4  ;;  %s1358_s29 = scalar_lea.sflag [#allocation7], %s2551_s3  ;;  %s2733_s15 = int_to_ptr.vmem [resolvable:$true] %s1377_s15 }
 0x5c1   : > { %s2109_s9 = scalar_lea.vmem %s2733_s15, 128  ;;  %s2228_s17 = smov [#allocation16]  }
 0x5c2   : > { %p2110_p13 = scmp.ne.s32.totalorder %s2733_s15, %s2109_s9  ;;  %s2113_s24 = sshll.u32 %s2228_s17, 4  ;;  %s2114_s24 = int_to_ptr.vmem [resolvable:$false] %s2113_s24 }
 0x5c3   : > { %s2115_s14 = scalar_lea.vmem %s2114_s24, 256  ;;  %p2116_p12 = scmp.lt.s32.totalorder %s2733_s15, %s2114_s24 }
 0x5c4   : > { %v1634_v14 = vld [vmem:[%s2869_s11] ss:$0 sm:$0xff]  ;;  %p2111_p6 = pnand %p2110_p13, %p2868_p7  ;;  %p2117_p8 = scmp.lt.s32.totalorder %s2115_s14, %s2109_s9 }
 0x5c5   : > { %s2731_s25 = scalar_lea.hbm %s2870_s1, %s1640_s26 }
 0x5c6   : > { %p2112_p0 = pneg %p2111_p6  ;;  %p2118_p11 = por %p2117_p8, %p2116_p12 }
 0x5c8   : > { %p2119_p10 = pnand %p2118_p11, %p2112_p0 }
 0x682   : > { %v1350_v15 = vpop.f32.mrb[20].mxu1 }
 0x683   : > { %v1351_v16 = vadd.f32 %v1634_v14, %v1350_v15  ;;  %v1755_v17 = vpop.f32.mrb[21].mxu1 }
 0x684   : > { %v1353_v18 = vpop.f32.mrb[22].mxu1 }
 0x685   : > { %v1756_v19 = vpop.f32.mrb[23].mxu1  ;;  %1356 = vst.msk [vmem:[%s564_s28] sm:$0xff] %vm604_vm1, %v1351_v16 }
 0x686   : > { %2122 = shalt.err (!%p2119_p10)
}
 0x687   : > { %s2123_s3 = scalar_lea.hbm %s2731_s25, 128  ;;  %s2127_s30 = scalar_lea.hbm %s2870_s1, 256 }
 0x688   : > { %p2124_p5 = scmp.ne.s32.totalorder %s2731_s25, %s2123_s3  ;;  %p2128_p4 = scmp.lt.u32.totalorder %s2731_s25, %s2870_s1 }
 0x689   : > { %p2129_p3 = scmp.lt.u32.totalorder %s2127_s30, %s2123_s3  ;;  %p2131_p13 = scmp.lt.u32.totalorder %s2123_s3, %s2731_s25 }
 0x68a   : > { %p2125_p9 = pnand %p2124_p5, %p2868_p7 }
 0x68b   : > { %p2130_p1 = por %p2129_p3, %p2128_p4 }
 0x68c   : > { %p2126_p2 = pneg %p2125_p9 }
 0x68d   : > { %p2132_p6 = por %p2131_p13, %p2130_p1 }
 0x68f   : > { %p2133_p0 = pnand %p2132_p6, %p2126_p2 }
 0x691   : > { %2136 = shalt.err (!%p2133_p0)
}
 0x692   : > { %1775 = dma.vmem_to_hbm [thread:$0]  (%p2868_p7), %s2733_s15, 128, %s2731_s25, %s1358_s29  }
 0x693 PF: > { %s2871_s27 = sld [smem:[#allocation25_spill]]  ;;  %s2872_s20 = sld [smem:[#allocation29_spill]] }
 0x694   : > { %s2873_s11 = sld [smem:[#allocation28_spill]] }
 0x699   : > { %s1406_s26 = sand.u32 1, %s2871_s27   ;;  %p2874_p12 = scmp.ne.s32.totalorder %s2872_s20, 0 }
 0x69a   : > { %p2875_p8 = scmp.ge.s32.totalorder %s2873_s11, 2  ;;  %s1407_s28 = scalar_lea.sflag [#allocation7], %s1406_s26 }
 0x69c   : > { %p1800_p11 = pnand %p2875_p8, %p2874_p12 }
 0x69e   : > { %2178 = dma.done.wait (!%p1800_p11), %s1407_s28, 128  }
 0x69f   : > { %2180 = vsyncadd (!%p1800_p11), %s1407_s28, 4294967168  ;;  %s1416_s21 = scalar_lea.sflag [#allocation18], %s1406_s26 }
 0x6a0   : > { %2182 = dma.done.wait (!%p1800_p11), %s1416_s21, 256  }
 0x6a1   : > { %2184 = vsyncadd (!%p1800_p11), %s1416_s21, 4294967040  ;;  %s37_s26 = sadd.s32 1, %s2873_s11   ;;  %s2876_s16 = sld [smem:[#allocation32_spill]] }
 0x6a2   : > { %p34_p10 = scmp.ge.s32.totalorder %s37_s26, 4   ;;  %s2877_s24 = sld [smem:[#allocation27_spill]] }
 0x6a3   : > { %s2878_s25 = sld [smem:[#allocation30_spill]]  ;;  %s2879_s21 = smov %s2191_s22 }
 0x6a4   : > { %s2880_s22 = smov %s2195_s23  ;;  %36 = sbr.rel (!%p34_p10) target bundleno = 21 (0x15), region = 169 }
 0x6a7   : > { %s2881_s23 = smov %s2876_s16 }
 0x6ab   :  { %1421 = vsyncpa [#allocation6], 1 }
 0x6ac   :  { %1423 = vsyncpa [#allocation6 + $0x1], 1 }
 0x6ad   :  { %1424 = vsyncpa [#allocation9], 1 }
 0x6ae   :  { %1426 = vsyncpa [#allocation9 + $0x1], 1 }
 0x6af   :  { %1427 = vsyncpa [#allocation12], 1 }
 0x6b0   :  { %1428 = vsyncpa [#allocation15], 1 }
 0x6b1   :  { %1429 = vsyncpa [#allocation7], 1 }
 0x6b2   :  { %1431 = vsyncpa [#allocation7 + $0x1], 1 }
 0x6b3   :  { %1432 = vsyncpa [#allocation18], 1 }
 0x6b4   :  { %1434 = vsyncpa [#allocation18 + $0x1], 1 }

</bundles_post_ra>
